<compile_context>
chip_gen: v7x
topology: tpu7x:2x2x1
jax: 0.10.0
libtpu: 0.0.40
codegen_flags: <defaults>
</compile_context>

<pallas_src>
import jax
import jax.numpy as jnp
from jax.experimental import pallas as pl
from jax.experimental.pallas import tpu as pltpu


# Canonical parameter order (kernel input refs 4 .. 4+len(PARAM_NAMES) follow this order).
PARAM_NAMES = (
    # decoder_rnn1: GRU(E, H), per-gate (gate order r, z, n), weights stored (in, H)
    'w1_ir', 'w1_iz', 'w1_in', 'w1_hr', 'w1_hz', 'w1_hn',
    'b1_r', 'b1_z', 'b1_in', 'b1_hn',
    # decoder_rnn2: GRU(E + 2H, H); input weight split into y-rows (E,H) and c_t-rows (2H,H)
    'w2y_ir', 'w2y_iz', 'w2y_in', 'w2c_ir', 'w2c_iz', 'w2c_in',
    'w2_hr', 'w2_hz', 'w2_hn', 'b2_r', 'b2_z', 'b2_in', 'b2_hn',
    # SimpleAttention
    'wd', 'bd', 'we', 'be', 'vw', 'vb',
    # latent / output linears
    'w_yh_ez', 'b_yh_ez', 'w_hh_ez', 'b_hh_ez',
    'w_mu', 'b_mu', 'w_logvar', 'b_logvar',
    'w_zh_dy', 'b_zh_dy', 'w_hh_dy', 'b_hh_dy',
    'w_hy', 'b_hy',
)


def _mxu(x, w):
    """bf16 MXU matmul with f32 accumulation."""
    return jnp.dot(x.astype(jnp.bfloat16), w.astype(jnp.bfloat16),
                   preferred_element_type=jnp.float32)


def _init_hidden(h_e, mask):
    """h_d_0 = (sum_fwd/len + sum_bwd/len) / 2 (used when h_d1/h_d2 are None)."""
    H = h_e.shape[-1] // 2
    # guard: a fully padded row would otherwise divide by zero (torch would NaN here)
    input_len = jnp.maximum(jnp.sum(mask, axis=1, keepdims=True), 1.0)        # (B, 1)
    he = h_e.astype(jnp.float32)
    h_fwd = jnp.sum(he[:, :, :H], axis=1)                                      # (B, H)
    h_bwd = jnp.sum(he[:, :, H:], axis=1)                                      # (B, H)
    return (h_fwd / input_len + h_bwd / input_len) * 0.5


def _decode_step(y, h_e, mask, eps, h_d1, h_d2, p):
    """One VAE.forward timestep (z=None). Shared by the Pallas kernel and the JAX reference."""
    H = h_d1.shape[-1]
    B, S, H2 = h_e.shape

    # ---- decoder_rnn1 (GRU, gate order r, z, n; per-gate weights -> no 3H-column slicing) ----
    r1 = jax.nn.sigmoid(_mxu(y, p['w1_ir']) + _mxu(h_d1, p['w1_hr']) + p['b1_r'])
    z1 = jax.nn.sigmoid(_mxu(y, p['w1_iz']) + _mxu(h_d1, p['w1_hz']) + p['b1_z'])
    n1 = jnp.tanh(_mxu(y, p['w1_in']) + p['b1_in']
                  + r1 * (_mxu(h_d1, p['w1_hn']) + p['b1_hn']))
    h_d1_t = (1.0 - z1) * n1 + z1 * h_d1                                       # (B, H)

    # ---- SimpleAttention ----
    wd_hd = (_mxu(h_d1_t, p['wd']) + p['bd'])[:, None, :]                      # (B, 1, H)
    we_he = (_mxu(h_e.reshape(B * S, H2), p['we']) + p['be']).reshape(B, S, H)
    t_act = jnp.tanh(wd_hd + we_he)                                            # (B, S, H)
    # score: VPU multiply + lane reduce instead of an output-width-1 matmul
    e_t = jnp.sum(t_act * p['vw'].astype(jnp.float32)[None, :, :], axis=-1) + p['vb'][0, 0]
    e_t = jnp.where(mask == 0.0, -1e10, e_t)                                   # masked_fill (f32)
    m = jnp.max(e_t, axis=-1, keepdims=True)
    ex = jnp.exp(e_t - m)
    a_t = ex / jnp.sum(ex, axis=-1, keepdims=True)                             # softmax (B, S)
    c_t = jnp.sum(a_t[:, :, None] * h_e.astype(jnp.float32), axis=1)           # (B, 2H)

    # ---- decoder_rnn2: input [y ; c_t] realised via split weights (no lane concat) ----
    r2 = jax.nn.sigmoid(_mxu(y, p['w2y_ir']) + _mxu(c_t, p['w2c_ir'])
                        + _mxu(h_d2, p['w2_hr']) + p['b2_r'])
    z2 = jax.nn.sigmoid(_mxu(y, p['w2y_iz']) + _mxu(c_t, p['w2c_iz'])
                        + _mxu(h_d2, p['w2_hz']) + p['b2_z'])
    n2 = jnp.tanh(_mxu(y, p['w2y_in']) + _mxu(c_t, p['w2c_in']) + p['b2_in']
                  + r2 * (_mxu(h_d2, p['w2_hn']) + p['b2_hn']))
    h_d2_t = (1.0 - z2) * n2 + z2 * h_d2                                       # (B, H)

    # ---- latent path (z argument is None; uses the PRE-step h_d1, as in torch) ----
    h_ez = jax.nn.sigmoid(_mxu(y, p['w_yh_ez']) + p['b_yh_ez']
                          + _mxu(h_d1, p['w_hh_ez']) + p['b_hh_ez'])
    mu = _mxu(h_ez, p['w_mu']) + p['b_mu']
    logvar = _mxu(h_ez, p['w_logvar']) + p['b_logvar']
    sigma = jnp.exp(0.5 * logvar)                      # == sqrt(exp(logvar)), single EUP op
    z_t = mu + sigma * eps                                                     # (B, H)

    h_dy = jnp.tanh(_mxu(z_t, p['w_zh_dy']) + p['b_zh_dy']
                    + _mxu(h_d2_t, p['w_hh_dy']) + p['b_hh_dy'])
    logits = _mxu(h_dy, p['w_hy']) + p['b_hy']                                 # (B, O)
    lm = jnp.max(logits, axis=-1, keepdims=True)
    y_t = logits - (lm + jnp.log(jnp.sum(jnp.exp(logits - lm), axis=-1, keepdims=True)))

    kl = 0.5 * jnp.sum(jnp.exp(logvar) + mu * mu - logvar - 1.0, axis=1, keepdims=True)
    return y_t, h_d1_t, h_d2_t, z_t, kl


# --------------------------------------- Pallas kernel ---------------------------------------
def vae_decode_kernel(*refs):
    n_p = len(PARAM_NAMES)
    y_ref, he_ref, mask_ref, eps_ref = refs[:4]
    param_refs = refs[4:4 + n_p]
    yt_ref, hd1_ref, hd2_ref, zt_ref, kl_ref = refs[4 + n_p:4 + n_p + 5]
    hd1_c, hd2_c = refs[4 + n_p + 5:]

    t = pl.program_id(0)
    h_e = he_ref[...]           # (B, S, 2H) bf16, VMEM-resident across all timesteps
    mask = mask_ref[...]        # (B, S) f32

    @pl.when(t == 0)
    def _():                    # h_d1 / h_d2 were None -> initialise carries with h_d_0
        h_d0 = _init_hidden(h_e, mask)
        hd1_c[...] = h_d0
        hd2_c[...] = h_d0

    p = {name: ref[...] for name, ref in zip(PARAM_NAMES, param_refs)}
    y_t, h_d1_t, h_d2_t, z_t, kl = _decode_step(
        y_ref[0], h_e, mask, eps_ref[0], hd1_c[...], hd2_c[...], p)

    # carry hidden state to the next grid step; emit this step's outputs
    hd1_c[...] = h_d1_t
    hd2_c[...] = h_d2_t
    yt_ref[0] = y_t
    hd1_ref[0] = h_d1_t
    hd2_ref[0] = h_d2_t
    zt_ref[0] = z_t
    kl_ref[0] = kl


# --------------------------------------- Wrapper ---------------------------------------------
def _cast_param(a):
    # 2-D matmul weights -> bf16 (half the DMA bytes / VMEM, 2x MXU rate on v6e/v7x);
    # (1, n) biases and the attention v-row stay f32 (added / reduced on the VPU in f32).
    return a.astype(jnp.bfloat16) if a.shape[0] > 1 else a.astype(jnp.float32)


def vae_decode(y_tokens, h_e, mask, eps_seq, params):
    """Run T teacher-forced decoder timesteps; step t reproduces VAE.forward(y_t, ..., z=None)."""
    T, B = y_tokens.shape
    H = params['w_mu'].shape[0]
    O = params['w_hy'].shape[1]

    # glue: embedding lookup for all timesteps at once (y = embedding(y).squeeze(1))
    y_emb = params['embed_w'][y_tokens].astype(jnp.bfloat16)                   # (T, B, E)
    h_e_b = h_e.astype(jnp.bfloat16)
    kparams = [_cast_param(params[n]) for n in PARAM_NAMES]

    inputs = [y_emb, h_e_b, mask.astype(jnp.float32), eps_seq.astype(jnp.float32)] + kparams

    def step_spec(shape):       # new block each timestep (streams per-step data)
        nd = len(shape)
        return pl.BlockSpec((1,) + tuple(shape[1:]),
                            lambda t, nd=nd: (t,) + (0,) * (nd - 1))

    def const_spec(a):          # grid-invariant: same block index every step -> DMA'd once
        return pl.BlockSpec(a.shape, lambda t, n=a.ndim: (0,) * n)

    in_specs = ([step_spec(y_emb.shape), const_spec(h_e_b), const_spec(mask),
                 step_spec(eps_seq.shape)]
                + [const_spec(a) for a in kparams])

    out_shapes = (
        jax.ShapeDtypeStruct((T, B, O), jnp.float32),   # y_t (log-probs)
        jax.ShapeDtypeStruct((T, B, H), jnp.float32),   # h_d1_t
        jax.ShapeDtypeStruct((T, B, H), jnp.float32),   # h_d2_t
        jax.ShapeDtypeStruct((T, B, H), jnp.float32),   # z_t
        jax.ShapeDtypeStruct((T, B, 1), jnp.float32),   # KL
    )
    out_specs = [step_spec(s.shape) for s in out_shapes]

    y_t, hd1, hd2, z_t, kl = pl.pallas_call(
        vae_decode_kernel,
        out_shape=out_shapes,
        grid_spec=pltpu.PrefetchScalarGridSpec(
            num_scalar_prefetch=0,
            grid=(T,),
            in_specs=in_specs,
            out_specs=out_specs,
            scratch_shapes=[pltpu.VMEM((B, H), jnp.float32),    # h_d1 carry
                            pltpu.VMEM((B, H), jnp.float32)],   # h_d2 carry
        ),
        compiler_params=pltpu.CompilerParams(
            # the timestep axis carries hidden state -> must stay sequential
            dimension_semantics=("arbitrary",)),
    )(*inputs)

    return y_t, hd1, hd2, z_t, kl[:, :, 0]


# --------------------------------------- Pure-JAX reference ----------------------------------
def vae_decode_ref(y_tokens, h_e, mask, eps_seq, params):
    y_emb = params['embed_w'][y_tokens].astype(jnp.bfloat16)
    h_e_b = h_e.astype(jnp.bfloat16)
    p = {n: _cast_param(params[n]) for n in PARAM_NAMES}
    h_d1 = h_d2 = _init_hidden(h_e_b, mask)
    outs = []
    for t in range(y_tokens.shape[0]):
        y_t, h_d1, h_d2, z_t, kl = _decode_step(
            y_emb[t], h_e_b, mask, eps_seq[t], h_d1, h_d2, p)
        outs.append((y_t, h_d1, h_d2, z_t, kl))
    stk = lambda i: jnp.stack([o[i] for o in outs], axis=0)
    return stk(0), stk(1), stk(2), stk(3), stk(4)[:, :, 0]


# --------------------------------------- Parameter init --------------------------------------
def init_params(key, vocab, E, H, O):
    ks = iter(jax.random.split(key, 64))

    def w(shape, scale=0.1):
        return (scale * jax.random.normal(next(ks), shape)).astype(jnp.float32)

    def b(n):
        return (0.1 * jax.random.normal(next(ks), (1, n))).astype(jnp.float32)

    p = {'embed_w': w((vocab, E), 1.0)}               # nn.Embedding.from_pretrained(embed_w)
    # decoder_rnn1: GRU(E, H)  (PyTorch (3H, in) weights split per gate & transposed to (in, H))
    for g in ('r', 'z', 'n'):
        p[f'w1_i{g}'] = w((E, H))
        p[f'w1_h{g}'] = w((H, H))
    p['b1_r'] = b(H) + b(H)       # b_ir + b_hr (always summed in the GRU cell)
    p['b1_z'] = b(H) + b(H)       # b_iz + b_hz
    p['b1_in'], p['b1_hn'] = b(H), b(H)
    # decoder_rnn2: GRU(E + 2H, H); input weight rows split into y-part and c_t-part
    for g in ('r', 'z', 'n'):
        p[f'w2y_i{g}'] = w((E, H))
        p[f'w2c_i{g}'] = w((2 * H, H))
        p[f'w2_h{g}'] = w((H, H))
    p['b2_r'] = b(H) + b(H)
    p['b2_z'] = b(H) + b(H)
    p['b2_in'], p['b2_hn'] = b(H), b(H)
    # SimpleAttention
    p['wd'], p['bd'] = w((H, H)), b(H)                # W_d: Linear(H, H)
    p['we'], p['be'] = w((2 * H, H)), b(H)            # W_e: Linear(2H, H)
    p['vw'], p['vb'] = w((1, H)), b(1)                # v: Linear(H, 1) weight stored as (1, H)
    # latent / output linears (W_zh_ez is only used when z is not None -> not materialised)
    p['w_yh_ez'], p['b_yh_ez'] = w((E, H)), b(H)
    p['w_hh_ez'], p['b_hh_ez'] = w((H, H)), b(H)
    p['w_mu'], p['b_mu'] = w((H, H)), b(H)
    p['w_logvar'], p['b_logvar'] = w((H, H)), b(H)
    p['w_zh_dy'], p['b_zh_dy'] = w((H, H)), b(H)
    p['w_hh_dy'], p['b_hh_dy'] = w((H, H)), b(H)
    p['w_hy'], p['b_hy'] = w((H, O)), b(O)
    return p


# ----------------------------------------------------------------------------------------------
if __name__ == "__main__":
    B, S, E, H, O, VOCAB, T = 2, 8, 16, 32, 32, 32, 4

    key = jax.random.PRNGKey(0)
    k_params, k_he, k_eps, k_y = jax.random.split(key, 4)
    params = init_params(k_params, VOCAB, E, H, O)

    # teacher-forced decoder input tokens, one per timestep (torch forward takes one (B,1) token)
    y_tokens = jax.random.randint(k_y, (T, B), 0, VOCAB, dtype=jnp.int32)

    # pre-encoded bidirectional encoder states + mask (last 3 positions of batch row 1 padded)
    mask = jnp.ones((B, S), jnp.float32).at[1, S - 3:].set(0.0)
    h_e = (0.5 * jax.random.normal(k_he, (B, S, 2 * H))).astype(jnp.float32)
    h_e = h_e * mask[:, :, None]               # masked_fill(mask == 0, 0) from `encode`

    # reparameterization noise (torch.randn) drawn in glue, one draw per timestep
    eps_seq = jax.random.normal(k_eps, (T, B, H)).astype(jnp.float32)

    y_t, h_d1, h_d2, z_t, KL = jax.jit(vae_decode)(y_tokens, h_e, mask, eps_seq, params)
    jax.block_until_ready((y_t, h_d1, h_d2, z_t, KL))

    assert y_t.shape == (T, B, O) and h_d1.shape == (T, B, H)
    assert h_d2.shape == (T, B, H) and z_t.shape == (T, B, H) and KL.shape == (T, B)
    # log_softmax rows must sum to 1 in prob space
    assert jnp.allclose(jnp.sum(jnp.exp(y_t), axis=-1), 1.0, atol=1e-3)

    # parity with the pure-JAX reference (same bf16 weight policy, same per-step math)
    ref_outs = vae_decode_ref(y_tokens, h_e, mask, eps_seq, params)
    for got, want in zip((y_t, h_d1, h_d2, z_t, KL), ref_outs):
        assert float(jnp.max(jnp.abs(got - want))) < 5e-2

    print("KERNEL_OK")
</pallas_src>

<mosaic_0001>
module attributes {stable_mosaic.version = 11 : i64} {
  func.func @vae_decode_kernel(%arg0: i32, %arg1: memref<1x2x16xbf16, #tpu.memory_space<vmem>>, %arg2: memref<2x8x64xbf16, #tpu.memory_space<vmem>>, %arg3: memref<2x8xf32, #tpu.memory_space<vmem>>, %arg4: memref<1x2x32xf32, #tpu.memory_space<vmem>>, %arg5: memref<16x32xbf16, #tpu.memory_space<vmem>>, %arg6: memref<16x32xbf16, #tpu.memory_space<vmem>>, %arg7: memref<16x32xbf16, #tpu.memory_space<vmem>>, %arg8: memref<32x32xbf16, #tpu.memory_space<vmem>>, %arg9: memref<32x32xbf16, #tpu.memory_space<vmem>>, %arg10: memref<32x32xbf16, #tpu.memory_space<vmem>>, %arg11: memref<1x32xf32, #tpu.memory_space<vmem>>, %arg12: memref<1x32xf32, #tpu.memory_space<vmem>>, %arg13: memref<1x32xf32, #tpu.memory_space<vmem>>, %arg14: memref<1x32xf32, #tpu.memory_space<vmem>>, %arg15: memref<16x32xbf16, #tpu.memory_space<vmem>>, %arg16: memref<16x32xbf16, #tpu.memory_space<vmem>>, %arg17: memref<16x32xbf16, #tpu.memory_space<vmem>>, %arg18: memref<64x32xbf16, #tpu.memory_space<vmem>>, %arg19: memref<64x32xbf16, #tpu.memory_space<vmem>>, %arg20: memref<64x32xbf16, #tpu.memory_space<vmem>>, %arg21: memref<32x32xbf16, #tpu.memory_space<vmem>>, %arg22: memref<32x32xbf16, #tpu.memory_space<vmem>>, %arg23: memref<32x32xbf16, #tpu.memory_space<vmem>>, %arg24: memref<1x32xf32, #tpu.memory_space<vmem>>, %arg25: memref<1x32xf32, #tpu.memory_space<vmem>>, %arg26: memref<1x32xf32, #tpu.memory_space<vmem>>, %arg27: memref<1x32xf32, #tpu.memory_space<vmem>>, %arg28: memref<32x32xbf16, #tpu.memory_space<vmem>>, %arg29: memref<1x32xf32, #tpu.memory_space<vmem>>, %arg30: memref<64x32xbf16, #tpu.memory_space<vmem>>, %arg31: memref<1x32xf32, #tpu.memory_space<vmem>>, %arg32: memref<1x32xf32, #tpu.memory_space<vmem>>, %arg33: memref<1x1xf32, #tpu.memory_space<vmem>>, %arg34: memref<16x32xbf16, #tpu.memory_space<vmem>>, %arg35: memref<1x32xf32, #tpu.memory_space<vmem>>, %arg36: memref<32x32xbf16, #tpu.memory_space<vmem>>, %arg37: memref<1x32xf32, #tpu.memory_space<vmem>>, %arg38: memref<32x32xbf16, #tpu.memory_space<vmem>>, %arg39: memref<1x32xf32, #tpu.memory_space<vmem>>, %arg40: memref<32x32xbf16, #tpu.memory_space<vmem>>, %arg41: memref<1x32xf32, #tpu.memory_space<vmem>>, %arg42: memref<32x32xbf16, #tpu.memory_space<vmem>>, %arg43: memref<1x32xf32, #tpu.memory_space<vmem>>, %arg44: memref<32x32xbf16, #tpu.memory_space<vmem>>, %arg45: memref<1x32xf32, #tpu.memory_space<vmem>>, %arg46: memref<32x32xbf16, #tpu.memory_space<vmem>>, %arg47: memref<1x32xf32, #tpu.memory_space<vmem>>, %arg48: memref<1x2x32xf32, #tpu.memory_space<vmem>>, %arg49: memref<1x2x32xf32, #tpu.memory_space<vmem>>, %arg50: memref<1x2x32xf32, #tpu.memory_space<vmem>>, %arg51: memref<1x2x32xf32, #tpu.memory_space<vmem>>, %arg52: memref<1x2x1xf32, #tpu.memory_space<vmem>>, %arg53: memref<2x32xf32, #tpu.memory_space<vmem>>, %arg54: memref<2x32xf32, #tpu.memory_space<vmem>>) attributes {dimension_semantics = [#tpu.dimension_semantics<arbitrary>], iteration_bounds = array<i64: 4>, scalar_prefetch = 0 : i64, scratch_operands = 2 : i64, tpu.core_type = #tpu.core_type<tc>, window_params = [{transform_indices = @transform_0, window_bounds = array<i64: 1, 2, 16>}, {pipeline_mode = #tpu.pipeline_mode<synchronous>, transform_indices = @transform_1, window_bounds = array<i64: 2, 8, 64>}, {pipeline_mode = #tpu.pipeline_mode<synchronous>, transform_indices = @transform_2, window_bounds = array<i64: 2, 8>}, {transform_indices = @transform_3, window_bounds = array<i64: 1, 2, 32>}, {pipeline_mode = #tpu.pipeline_mode<synchronous>, transform_indices = @transform_4, window_bounds = array<i64: 16, 32>}, {pipeline_mode = #tpu.pipeline_mode<synchronous>, transform_indices = @transform_5, window_bounds = array<i64: 16, 32>}, {pipeline_mode = #tpu.pipeline_mode<synchronous>, transform_indices = @transform_6, window_bounds = array<i64: 16, 32>}, {pipeline_mode = #tpu.pipeline_mode<synchronous>, transform_indices = @transform_7, window_bounds = array<i64: 32, 32>}, {pipeline_mode = #tpu.pipeline_mode<synchronous>, transform_indices = @transform_8, window_bounds = array<i64: 32, 32>}, {pipeline_mode = #tpu.pipeline_mode<synchronous>, transform_indices = @transform_9, window_bounds = array<i64: 32, 32>}, {pipeline_mode = #tpu.pipeline_mode<synchronous>, transform_indices = @transform_10, window_bounds = array<i64: 1, 32>}, {pipeline_mode = #tpu.pipeline_mode<synchronous>, transform_indices = @transform_11, window_bounds = array<i64: 1, 32>}, {pipeline_mode = #tpu.pipeline_mode<synchronous>, transform_indices = @transform_12, window_bounds = array<i64: 1, 32>}, {pipeline_mode = #tpu.pipeline_mode<synchronous>, transform_indices = @transform_13, window_bounds = array<i64: 1, 32>}, {pipeline_mode = #tpu.pipeline_mode<synchronous>, transform_indices = @transform_14, window_bounds = array<i64: 16, 32>}, {pipeline_mode = #tpu.pipeline_mode<synchronous>, transform_indices = @transform_15, window_bounds = array<i64: 16, 32>}, {pipeline_mode = #tpu.pipeline_mode<synchronous>, transform_indices = @transform_16, window_bounds = array<i64: 16, 32>}, {pipeline_mode = #tpu.pipeline_mode<synchronous>, transform_indices = @transform_17, window_bounds = array<i64: 64, 32>}, {pipeline_mode = #tpu.pipeline_mode<synchronous>, transform_indices = @transform_18, window_bounds = array<i64: 64, 32>}, {pipeline_mode = #tpu.pipeline_mode<synchronous>, transform_indices = @transform_19, window_bounds = array<i64: 64, 32>}, {pipeline_mode = #tpu.pipeline_mode<synchronous>, transform_indices = @transform_20, window_bounds = array<i64: 32, 32>}, {pipeline_mode = #tpu.pipeline_mode<synchronous>, transform_indices = @transform_21, window_bounds = array<i64: 32, 32>}, {pipeline_mode = #tpu.pipeline_mode<synchronous>, transform_indices = @transform_22, window_bounds = array<i64: 32, 32>}, {pipeline_mode = #tpu.pipeline_mode<synchronous>, transform_indices = @transform_23, window_bounds = array<i64: 1, 32>}, {pipeline_mode = #tpu.pipeline_mode<synchronous>, transform_indices = @transform_24, window_bounds = array<i64: 1, 32>}, {pipeline_mode = #tpu.pipeline_mode<synchronous>, transform_indices = @transform_25, window_bounds = array<i64: 1, 32>}, {pipeline_mode = #tpu.pipeline_mode<synchronous>, transform_indices = @transform_26, window_bounds = array<i64: 1, 32>}, {pipeline_mode = #tpu.pipeline_mode<synchronous>, transform_indices = @transform_27, window_bounds = array<i64: 32, 32>}, {pipeline_mode = #tpu.pipeline_mode<synchronous>, transform_indices = @transform_28, window_bounds = array<i64: 1, 32>}, {pipeline_mode = #tpu.pipeline_mode<synchronous>, transform_indices = @transform_29, window_bounds = array<i64: 64, 32>}, {pipeline_mode = #tpu.pipeline_mode<synchronous>, transform_indices = @transform_30, window_bounds = array<i64: 1, 32>}, {pipeline_mode = #tpu.pipeline_mode<synchronous>, transform_indices = @transform_31, window_bounds = array<i64: 1, 32>}, {pipeline_mode = #tpu.pipeline_mode<synchronous>, transform_indices = @transform_32, window_bounds = array<i64: 1, 1>}, {pipeline_mode = #tpu.pipeline_mode<synchronous>, transform_indices = @transform_33, window_bounds = array<i64: 16, 32>}, {pipeline_mode = #tpu.pipeline_mode<synchronous>, transform_indices = @transform_34, window_bounds = array<i64: 1, 32>}, {pipeline_mode = #tpu.pipeline_mode<synchronous>, transform_indices = @transform_35, window_bounds = array<i64: 32, 32>}, {pipeline_mode = #tpu.pipeline_mode<synchronous>, transform_indices = @transform_36, window_bounds = array<i64: 1, 32>}, {pipeline_mode = #tpu.pipeline_mode<synchronous>, transform_indices = @transform_37, window_bounds = array<i64: 32, 32>}, {pipeline_mode = #tpu.pipeline_mode<synchronous>, transform_indices = @transform_38, window_bounds = array<i64: 1, 32>}, {pipeline_mode = #tpu.pipeline_mode<synchronous>, transform_indices = @transform_39, window_bounds = array<i64: 32, 32>}, {pipeline_mode = #tpu.pipeline_mode<synchronous>, transform_indices = @transform_40, window_bounds = array<i64: 1, 32>}, {pipeline_mode = #tpu.pipeline_mode<synchronous>, transform_indices = @transform_41, window_bounds = array<i64: 32, 32>}, {pipeline_mode = #tpu.pipeline_mode<synchronous>, transform_indices = @transform_42, window_bounds = array<i64: 1, 32>}, {pipeline_mode = #tpu.pipeline_mode<synchronous>, transform_indices = @transform_43, window_bounds = array<i64: 32, 32>}, {pipeline_mode = #tpu.pipeline_mode<synchronous>, transform_indices = @transform_44, window_bounds = array<i64: 1, 32>}, {pipeline_mode = #tpu.pipeline_mode<synchronous>, transform_indices = @transform_45, window_bounds = array<i64: 32, 32>}, {pipeline_mode = #tpu.pipeline_mode<synchronous>, transform_indices = @transform_46, window_bounds = array<i64: 1, 32>}, {transform_indices = @transform_47, window_bounds = array<i64: 1, 2, 32>}, {transform_indices = @transform_48, window_bounds = array<i64: 1, 2, 32>}, {transform_indices = @transform_49, window_bounds = array<i64: 1, 2, 32>}, {transform_indices = @transform_50, window_bounds = array<i64: 1, 2, 32>}, {transform_indices = @transform_51, window_bounds = array<i64: 1, 2, 1>}]} {
    %c0 = arith.constant 0 : index
    %c0_0 = arith.constant 0 : index
    %c0_1 = arith.constant 0 : index
    %0 = vector.load %arg2[%c0, %c0_0, %c0_1] : memref<2x8x64xbf16, #tpu.memory_space<vmem>>, vector<2x8x64xbf16>
    %c0_2 = arith.constant 0 : index
    %c0_3 = arith.constant 0 : index
    %1 = vector.load %arg3[%c0_2, %c0_3] : memref<2x8xf32, #tpu.memory_space<vmem>>, vector<2x8xf32>
    %c0_i32 = arith.constant 0 : i32
    %2 = arith.cmpi eq, %arg0, %c0_i32 : i32
    %3 = arith.extui %2 : i1 to i32
    %c0_i32_4 = arith.constant 0 : i32
    %4 = arith.cmpi ne, %3, %c0_i32_4 : i32
    scf.if %4 {
      %cst_162 = arith.constant dense<0.000000e+00> : vector<2xf32>
      %253 = vector.multi_reduction <add>, %1, %cst_162 [1] : vector<2x8xf32> to vector<2xf32>
      %254 = vector.shape_cast %253 : vector<2xf32> to vector<2x1xf32>
      %cst_163 = arith.constant 1.000000e+00 : f32
      %255 = vector.broadcast %cst_163 : f32 to vector<2x1xf32>
      %256 = arith.maximumf %254, %255 : vector<2x1xf32>
      %257 = arith.extf %0 : vector<2x8x64xbf16> to vector<2x8x64xf32>
      %258 = vector.extract_strided_slice %257 {offsets = [0, 0, 0], sizes = [2, 8, 32], strides = [1, 1, 1]} : vector<2x8x64xf32> to vector<2x8x32xf32>
      %cst_164 = arith.constant dense<0.000000e+00> : vector<2x32xf32>
      %259 = vector.multi_reduction <add>, %258, %cst_164 [1] : vector<2x8x32xf32> to vector<2x32xf32>
      %260 = vector.extract_strided_slice %257 {offsets = [0, 0, 32], sizes = [2, 8, 32], strides = [1, 1, 1]} : vector<2x8x64xf32> to vector<2x8x32xf32>
      %cst_165 = arith.constant dense<0.000000e+00> : vector<2x32xf32>
      %261 = vector.multi_reduction <add>, %260, %cst_165 [1] : vector<2x8x32xf32> to vector<2x32xf32>
      %262 = vector.broadcast %256 : vector<2x1xf32> to vector<2x32xf32>
      %263 = arith.divf %259, %262 : vector<2x32xf32>
      %264 = vector.broadcast %256 : vector<2x1xf32> to vector<2x32xf32>
      %265 = arith.divf %261, %264 : vector<2x32xf32>
      %266 = arith.addf %263, %265 : vector<2x32xf32>
      %cst_166 = arith.constant 5.000000e-01 : f32
      %267 = vector.broadcast %cst_166 : f32 to vector<2x32xf32>
      %268 = arith.mulf %266, %267 : vector<2x32xf32>
      %c0_167 = arith.constant 0 : index
      %c0_168 = arith.constant 0 : index
      %269 = vector.load %arg53[%c0_167, %c0_168] : memref<2x32xf32, #tpu.memory_space<vmem>>, vector<2x32xf32>
      tpu.vector_store %arg53[%c0_167, %c0_168], %268 {strides = array<i32>} : memref<2x32xf32, #tpu.memory_space<vmem>>, vector<2x32xf32>,
      %c0_169 = arith.constant 0 : index
      %c0_170 = arith.constant 0 : index
      %270 = vector.load %arg54[%c0_169, %c0_170] : memref<2x32xf32, #tpu.memory_space<vmem>>, vector<2x32xf32>
      tpu.vector_store %arg54[%c0_169, %c0_170], %268 {strides = array<i32>} : memref<2x32xf32, #tpu.memory_space<vmem>>, vector<2x32xf32>,
    } else {
    }
    %c0_5 = arith.constant 0 : index
    %c0_6 = arith.constant 0 : index
    %5 = vector.load %arg5[%c0_5, %c0_6] : memref<16x32xbf16, #tpu.memory_space<vmem>>, vector<16x32xbf16>
    %c0_7 = arith.constant 0 : index
    %c0_8 = arith.constant 0 : index
    %6 = vector.load %arg6[%c0_7, %c0_8] : memref<16x32xbf16, #tpu.memory_space<vmem>>, vector<16x32xbf16>
    %c0_9 = arith.constant 0 : index
    %c0_10 = arith.constant 0 : index
    %7 = vector.load %arg7[%c0_9, %c0_10] : memref<16x32xbf16, #tpu.memory_space<vmem>>, vector<16x32xbf16>
    %c0_11 = arith.constant 0 : index
    %c0_12 = arith.constant 0 : index
    %8 = vector.load %arg8[%c0_11, %c0_12] : memref<32x32xbf16, #tpu.memory_space<vmem>>, vector<32x32xbf16>
    %c0_13 = arith.constant 0 : index
    %c0_14 = arith.constant 0 : index
    %9 = vector.load %arg9[%c0_13, %c0_14] : memref<32x32xbf16, #tpu.memory_space<vmem>>, vector<32x32xbf16>
    %c0_15 = arith.constant 0 : index
    %c0_16 = arith.constant 0 : index
    %10 = vector.load %arg10[%c0_15, %c0_16] : memref<32x32xbf16, #tpu.memory_space<vmem>>, vector<32x32xbf16>
    %c0_17 = arith.constant 0 : index
    %c0_18 = arith.constant 0 : index
    %11 = vector.load %arg11[%c0_17, %c0_18] : memref<1x32xf32, #tpu.memory_space<vmem>>, vector<1x32xf32>
    %c0_19 = arith.constant 0 : index
    %c0_20 = arith.constant 0 : index
    %12 = vector.load %arg12[%c0_19, %c0_20] : memref<1x32xf32, #tpu.memory_space<vmem>>, vector<1x32xf32>
    %c0_21 = arith.constant 0 : index
    %c0_22 = arith.constant 0 : index
    %13 = vector.load %arg13[%c0_21, %c0_22] : memref<1x32xf32, #tpu.memory_space<vmem>>, vector<1x32xf32>
    %c0_23 = arith.constant 0 : index
    %c0_24 = arith.constant 0 : index
    %14 = vector.load %arg14[%c0_23, %c0_24] : memref<1x32xf32, #tpu.memory_space<vmem>>, vector<1x32xf32>
    %c0_25 = arith.constant 0 : index
    %c0_26 = arith.constant 0 : index
    %15 = vector.load %arg15[%c0_25, %c0_26] : memref<16x32xbf16, #tpu.memory_space<vmem>>, vector<16x32xbf16>
    %c0_27 = arith.constant 0 : index
    %c0_28 = arith.constant 0 : index
    %16 = vector.load %arg16[%c0_27, %c0_28] : memref<16x32xbf16, #tpu.memory_space<vmem>>, vector<16x32xbf16>
    %c0_29 = arith.constant 0 : index
    %c0_30 = arith.constant 0 : index
    %17 = vector.load %arg17[%c0_29, %c0_30] : memref<16x32xbf16, #tpu.memory_space<vmem>>, vector<16x32xbf16>
    %c0_31 = arith.constant 0 : index
    %c0_32 = arith.constant 0 : index
    %18 = vector.load %arg18[%c0_31, %c0_32] : memref<64x32xbf16, #tpu.memory_space<vmem>>, vector<64x32xbf16>
    %c0_33 = arith.constant 0 : index
    %c0_34 = arith.constant 0 : index
    %19 = vector.load %arg19[%c0_33, %c0_34] : memref<64x32xbf16, #tpu.memory_space<vmem>>, vector<64x32xbf16>
    %c0_35 = arith.constant 0 : index
    %c0_36 = arith.constant 0 : index
    %20 = vector.load %arg20[%c0_35, %c0_36] : memref<64x32xbf16, #tpu.memory_space<vmem>>, vector<64x32xbf16>
    %c0_37 = arith.constant 0 : index
    %c0_38 = arith.constant 0 : index
    %21 = vector.load %arg21[%c0_37, %c0_38] : memref<32x32xbf16, #tpu.memory_space<vmem>>, vector<32x32xbf16>
    %c0_39 = arith.constant 0 : index
    %c0_40 = arith.constant 0 : index
    %22 = vector.load %arg22[%c0_39, %c0_40] : memref<32x32xbf16, #tpu.memory_space<vmem>>, vector<32x32xbf16>
    %c0_41 = arith.constant 0 : index
    %c0_42 = arith.constant 0 : index
    %23 = vector.load %arg23[%c0_41, %c0_42] : memref<32x32xbf16, #tpu.memory_space<vmem>>, vector<32x32xbf16>
    %c0_43 = arith.constant 0 : index
    %c0_44 = arith.constant 0 : index
    %24 = vector.load %arg24[%c0_43, %c0_44] : memref<1x32xf32, #tpu.memory_space<vmem>>, vector<1x32xf32>
    %c0_45 = arith.constant 0 : index
    %c0_46 = arith.constant 0 : index
    %25 = vector.load %arg25[%c0_45, %c0_46] : memref<1x32xf32, #tpu.memory_space<vmem>>, vector<1x32xf32>
    %c0_47 = arith.constant 0 : index
    %c0_48 = arith.constant 0 : index
    %26 = vector.load %arg26[%c0_47, %c0_48] : memref<1x32xf32, #tpu.memory_space<vmem>>, vector<1x32xf32>
    %c0_49 = arith.constant 0 : index
    %c0_50 = arith.constant 0 : index
    %27 = vector.load %arg27[%c0_49, %c0_50] : memref<1x32xf32, #tpu.memory_space<vmem>>, vector<1x32xf32>
    %c0_51 = arith.constant 0 : index
    %c0_52 = arith.constant 0 : index
    %28 = vector.load %arg28[%c0_51, %c0_52] : memref<32x32xbf16, #tpu.memory_space<vmem>>, vector<32x32xbf16>
    %c0_53 = arith.constant 0 : index
    %c0_54 = arith.constant 0 : index
    %29 = vector.load %arg29[%c0_53, %c0_54] : memref<1x32xf32, #tpu.memory_space<vmem>>, vector<1x32xf32>
    %c0_55 = arith.constant 0 : index
    %c0_56 = arith.constant 0 : index
    %30 = vector.load %arg30[%c0_55, %c0_56] : memref<64x32xbf16, #tpu.memory_space<vmem>>, vector<64x32xbf16>
    %c0_57 = arith.constant 0 : index
    %c0_58 = arith.constant 0 : index
    %31 = vector.load %arg31[%c0_57, %c0_58] : memref<1x32xf32, #tpu.memory_space<vmem>>, vector<1x32xf32>
    %c0_59 = arith.constant 0 : index
    %c0_60 = arith.constant 0 : index
    %32 = vector.load %arg32[%c0_59, %c0_60] : memref<1x32xf32, #tpu.memory_space<vmem>>, vector<1x32xf32>
    %c0_61 = arith.constant 0 : index
    %c0_62 = arith.constant 0 : index
    %33 = vector.load %arg33[%c0_61, %c0_62] : memref<1x1xf32, #tpu.memory_space<vmem>>, vector<1x1xf32>
    %c0_63 = arith.constant 0 : index
    %c0_64 = arith.constant 0 : index
    %34 = vector.load %arg34[%c0_63, %c0_64] : memref<16x32xbf16, #tpu.memory_space<vmem>>, vector<16x32xbf16>
    %c0_65 = arith.constant 0 : index
    %c0_66 = arith.constant 0 : index
    %35 = vector.load %arg35[%c0_65, %c0_66] : memref<1x32xf32, #tpu.memory_space<vmem>>, vector<1x32xf32>
    %c0_67 = arith.constant 0 : index
    %c0_68 = arith.constant 0 : index
    %36 = vector.load %arg36[%c0_67, %c0_68] : memref<32x32xbf16, #tpu.memory_space<vmem>>, vector<32x32xbf16>
    %c0_69 = arith.constant 0 : index
    %c0_70 = arith.constant 0 : index
    %37 = vector.load %arg37[%c0_69, %c0_70] : memref<1x32xf32, #tpu.memory_space<vmem>>, vector<1x32xf32>
    %c0_71 = arith.constant 0 : index
    %c0_72 = arith.constant 0 : index
    %38 = vector.load %arg38[%c0_71, %c0_72] : memref<32x32xbf16, #tpu.memory_space<vmem>>, vector<32x32xbf16>
    %c0_73 = arith.constant 0 : index
    %c0_74 = arith.constant 0 : index
    %39 = vector.load %arg39[%c0_73, %c0_74] : memref<1x32xf32, #tpu.memory_space<vmem>>, vector<1x32xf32>
    %c0_75 = arith.constant 0 : index
    %c0_76 = arith.constant 0 : index
    %40 = vector.load %arg40[%c0_75, %c0_76] : memref<32x32xbf16, #tpu.memory_space<vmem>>, vector<32x32xbf16>
    %c0_77 = arith.constant 0 : index
    %c0_78 = arith.constant 0 : index
    %41 = vector.load %arg41[%c0_77, %c0_78] : memref<1x32xf32, #tpu.memory_space<vmem>>, vector<1x32xf32>
    %c0_79 = arith.constant 0 : index
    %c0_80 = arith.constant 0 : index
    %42 = vector.load %arg42[%c0_79, %c0_80] : memref<32x32xbf16, #tpu.memory_space<vmem>>, vector<32x32xbf16>
    %c0_81 = arith.constant 0 : index
    %c0_82 = arith.constant 0 : index
    %43 = vector.load %arg43[%c0_81, %c0_82] : memref<1x32xf32, #tpu.memory_space<vmem>>, vector<1x32xf32>
    %c0_83 = arith.constant 0 : index
    %c0_84 = arith.constant 0 : index
    %44 = vector.load %arg44[%c0_83, %c0_84] : memref<32x32xbf16, #tpu.memory_space<vmem>>, vector<32x32xbf16>
    %c0_85 = arith.constant 0 : index
    %c0_86 = arith.constant 0 : index
    %45 = vector.load %arg45[%c0_85, %c0_86] : memref<1x32xf32, #tpu.memory_space<vmem>>, vector<1x32xf32>
    %c0_87 = arith.constant 0 : index
    %c0_88 = arith.constant 0 : index
    %46 = vector.load %arg46[%c0_87, %c0_88] : memref<32x32xbf16, #tpu.memory_space<vmem>>, vector<32x32xbf16>
    %c0_89 = arith.constant 0 : index
    %c0_90 = arith.constant 0 : index
    %47 = vector.load %arg47[%c0_89, %c0_90] : memref<1x32xf32, #tpu.memory_space<vmem>>, vector<1x32xf32>
    %c0_91 = arith.constant 0 : index
    %c0_92 = arith.constant 0 : index
    %c0_93 = arith.constant 0 : index
    %48 = vector.load %arg1[%c0_91, %c0_92, %c0_93] : memref<1x2x16xbf16, #tpu.memory_space<vmem>>, vector<1x2x16xbf16>
    %49 = vector.shape_cast %48 : vector<1x2x16xbf16> to vector<2x16xbf16>
    %c0_94 = arith.constant 0 : index
    %c0_95 = arith.constant 0 : index
    %c0_96 = arith.constant 0 : index
    %50 = vector.load %arg4[%c0_94, %c0_95, %c0_96] : memref<1x2x32xf32, #tpu.memory_space<vmem>>, vector<1x2x32xf32>
    %51 = vector.shape_cast %50 : vector<1x2x32xf32> to vector<2x32xf32>
    %c0_97 = arith.constant 0 : index
    %c0_98 = arith.constant 0 : index
    %52 = vector.load %arg53[%c0_97, %c0_98] : memref<2x32xf32, #tpu.memory_space<vmem>>, vector<2x32xf32>
    %c0_99 = arith.constant 0 : index
    %c0_100 = arith.constant 0 : index
    %53 = vector.load %arg54[%c0_99, %c0_100] : memref<2x32xf32, #tpu.memory_space<vmem>>, vector<2x32xf32>
    %cst = arith.constant dense<0.000000e+00> : vector<2x32xf32>
    %54 = tpu.matmul %49, %5, %cst {dimension_numbers = #tpu.dot_dimension_numbers<[1], [0], [0], [1], [0, 0, 1, 1], [], []>} : vector<2x16xbf16>, vector<16x32xbf16>, vector<2x32xf32> -> vector<2x32xf32>
    %55 = arith.truncf %52 : vector<2x32xf32> to vector<2x32xbf16>
    %cst_101 = arith.constant dense<0.000000e+00> : vector<2x32xf32>
    %56 = tpu.matmul %55, %8, %cst_101 {dimension_numbers = #tpu.dot_dimension_numbers<[1], [0], [0], [1], [0, 0, 1, 1], [], []>} : vector<2x32xbf16>, vector<32x32xbf16>, vector<2x32xf32> -> vector<2x32xf32>
    %57 = arith.addf %54, %56 : vector<2x32xf32>
    %58 = vector.broadcast %11 : vector<1x32xf32> to vector<2x32xf32>
    %59 = arith.addf %57, %58 : vector<2x32xf32>
    %60 = arith.negf %59 : vector<2x32xf32>
    %61 = math.exp %60 : vector<2x32xf32>
    %cst_102 = arith.constant 1.000000e+00 : f32
    %62 = vector.broadcast %cst_102 : f32 to vector<2x32xf32>
    %63 = arith.addf %62, %61 : vector<2x32xf32>
    %64 = arith.divf %62, %63 : vector<2x32xf32>
    %cst_103 = arith.constant dense<0.000000e+00> : vector<2x32xf32>
    %65 = tpu.matmul %49, %6, %cst_103 {dimension_numbers = #tpu.dot_dimension_numbers<[1], [0], [0], [1], [0, 0, 1, 1], [], []>} : vector<2x16xbf16>, vector<16x32xbf16>, vector<2x32xf32> -> vector<2x32xf32>
    %66 = arith.truncf %52 : vector<2x32xf32> to vector<2x32xbf16>
    %cst_104 = arith.constant dense<0.000000e+00> : vector<2x32xf32>
    %67 = tpu.matmul %66, %9, %cst_104 {dimension_numbers = #tpu.dot_dimension_numbers<[1], [0], [0], [1], [0, 0, 1, 1], [], []>} : vector<2x32xbf16>, vector<32x32xbf16>, vector<2x32xf32> -> vector<2x32xf32>
    %68 = arith.addf %65, %67 : vector<2x32xf32>
    %69 = vector.broadcast %12 : vector<1x32xf32> to vector<2x32xf32>
    %70 = arith.addf %68, %69 : vector<2x32xf32>
    %71 = arith.negf %70 : vector<2x32xf32>
    %72 = math.exp %71 : vector<2x32xf32>
    %cst_105 = arith.constant 1.000000e+00 : f32
    %73 = vector.broadcast %cst_105 : f32 to vector<2x32xf32>
    %74 = arith.addf %73, %72 : vector<2x32xf32>
    %75 = arith.divf %73, %74 : vector<2x32xf32>
    %cst_106 = arith.constant dense<0.000000e+00> : vector<2x32xf32>
    %76 = tpu.matmul %49, %7, %cst_106 {dimension_numbers = #tpu.dot_dimension_numbers<[1], [0], [0], [1], [0, 0, 1, 1], [], []>} : vector<2x16xbf16>, vector<16x32xbf16>, vector<2x32xf32> -> vector<2x32xf32>
    %77 = vector.broadcast %13 : vector<1x32xf32> to vector<2x32xf32>
    %78 = arith.addf %76, %77 : vector<2x32xf32>
    %79 = arith.truncf %52 : vector<2x32xf32> to vector<2x32xbf16>
    %cst_107 = arith.constant dense<0.000000e+00> : vector<2x32xf32>
    %80 = tpu.matmul %79, %10, %cst_107 {dimension_numbers = #tpu.dot_dimension_numbers<[1], [0], [0], [1], [0, 0, 1, 1], [], []>} : vector<2x32xbf16>, vector<32x32xbf16>, vector<2x32xf32> -> vector<2x32xf32>
    %81 = vector.broadcast %14 : vector<1x32xf32> to vector<2x32xf32>
    %82 = arith.addf %80, %81 : vector<2x32xf32>
    %83 = arith.mulf %64, %82 : vector<2x32xf32>
    %84 = arith.addf %78, %83 : vector<2x32xf32>
    %85 = math.tanh %84 : vector<2x32xf32>
    %cst_108 = arith.constant 1.000000e+00 : f32
    %86 = vector.broadcast %cst_108 : f32 to vector<2x32xf32>
    %87 = arith.subf %86, %75 : vector<2x32xf32>
    %88 = arith.mulf %87, %85 : vector<2x32xf32>
    %89 = arith.mulf %75, %52 : vector<2x32xf32>
    %90 = arith.addf %88, %89 : vector<2x32xf32>
    %91 = arith.truncf %90 : vector<2x32xf32> to vector<2x32xbf16>
    %cst_109 = arith.constant dense<0.000000e+00> : vector<2x32xf32>
    %92 = tpu.matmul %91, %28, %cst_109 {dimension_numbers = #tpu.dot_dimension_numbers<[1], [0], [0], [1], [0, 0, 1, 1], [], []>} : vector<2x32xbf16>, vector<32x32xbf16>, vector<2x32xf32> -> vector<2x32xf32>
    %93 = vector.broadcast %29 : vector<1x32xf32> to vector<2x32xf32>
    %94 = arith.addf %92, %93 : vector<2x32xf32>
    %95 = vector.shape_cast %94 : vector<2x32xf32> to vector<2x1x32xf32>
    %96 = vector.shape_cast %0 : vector<2x8x64xbf16> to vector<16x64xbf16>
    %cst_110 = arith.constant dense<0.000000e+00> : vector<16x32xf32>
    %97 = tpu.matmul %96, %30, %cst_110 {dimension_numbers = #tpu.dot_dimension_numbers<[1], [0], [0], [1], [0, 0, 1, 1], [], []>} : vector<16x64xbf16>, vector<64x32xbf16>, vector<16x32xf32> -> vector<16x32xf32>
    %98 = vector.broadcast %31 : vector<1x32xf32> to vector<16x32xf32>
    %99 = arith.addf %97, %98 : vector<16x32xf32>
    %100 = vector.shape_cast %99 : vector<16x32xf32> to vector<2x8x32xf32>
    %101 = vector.broadcast %95 : vector<2x1x32xf32> to vector<2x8x32xf32>
    %102 = arith.addf %101, %100 : vector<2x8x32xf32>
    %103 = math.tanh %102 : vector<2x8x32xf32>
    %104 = vector.shape_cast %32 : vector<1x32xf32> to vector<1x1x32xf32>
    %105 = vector.broadcast %104 : vector<1x1x32xf32> to vector<2x8x32xf32>
    %106 = arith.mulf %103, %105 : vector<2x8x32xf32>
    %cst_111 = arith.constant dense<0.000000e+00> : vector<2x8xf32>
    %107 = vector.multi_reduction <add>, %106, %cst_111 [2] : vector<2x8x32xf32> to vector<2x8xf32>
    %108 = vector.extract %33[0, 0] : f32 from vector<1x1xf32>
    %109 = vector.broadcast %108 : f32 to vector<2x8xf32>
    %110 = arith.addf %107, %109 : vector<2x8xf32>
    %cst_112 = arith.constant 0.000000e+00 : f32
    %111 = vector.broadcast %cst_112 : f32 to vector<2x8xf32>
    %112 = arith.cmpf oeq, %1, %111 : vector<2x8xf32>
    %cst_113 = arith.constant -1.000000e+10 : f32
    %113 = vector.broadcast %cst_113 : f32 to vector<2x8xf32>
    %114 = arith.select %112, %113, %110 : vector<2x8xi1>, vector<2x8xf32>
    %cst_114 = arith.constant dense<0xFF800000> : vector<2xf32>
    %115 = vector.multi_reduction <maximumf>, %114, %cst_114 [1] : vector<2x8xf32> to vector<2xf32>
    %116 = vector.shape_cast %115 : vector<2xf32> to vector<2x1xf32>
    %117 = vector.broadcast %116 : vector<2x1xf32> to vector<2x8xf32>
    %118 = arith.subf %114, %117 : vector<2x8xf32>
    %119 = math.exp %118 : vector<2x8xf32>
    %cst_115 = arith.constant dense<0.000000e+00> : vector<2xf32>
    %120 = vector.multi_reduction <add>, %119, %cst_115 [1] : vector<2x8xf32> to vector<2xf32>
    %121 = vector.shape_cast %120 : vector<2xf32> to vector<2x1xf32>
    %122 = vector.broadcast %121 : vector<2x1xf32> to vector<2x8xf32>
    %123 = arith.divf %119, %122 : vector<2x8xf32>
    %124 = vector.shape_cast %123 : vector<2x8xf32> to vector<2x8x1xf32>
    %125 = arith.extf %0 : vector<2x8x64xbf16> to vector<2x8x64xf32>
    %126 = vector.broadcast %124 : vector<2x8x1xf32> to vector<2x8x64xf32>
    %127 = arith.mulf %126, %125 : vector<2x8x64xf32>
    %cst_116 = arith.constant dense<0.000000e+00> : vector<2x64xf32>
    %128 = vector.multi_reduction <add>, %127, %cst_116 [1] : vector<2x8x64xf32> to vector<2x64xf32>
    %cst_117 = arith.constant dense<0.000000e+00> : vector<2x32xf32>
    %129 = tpu.matmul %49, %15, %cst_117 {dimension_numbers = #tpu.dot_dimension_numbers<[1], [0], [0], [1], [0, 0, 1, 1], [], []>} : vector<2x16xbf16>, vector<16x32xbf16>, vector<2x32xf32> -> vector<2x32xf32>
    %130 = arith.truncf %128 : vector<2x64xf32> to vector<2x64xbf16>
    %cst_118 = arith.constant dense<0.000000e+00> : vector<2x32xf32>
    %131 = tpu.matmul %130, %18, %cst_118 {dimension_numbers = #tpu.dot_dimension_numbers<[1], [0], [0], [1], [0, 0, 1, 1], [], []>} : vector<2x64xbf16>, vector<64x32xbf16>, vector<2x32xf32> -> vector<2x32xf32>
    %132 = arith.addf %129, %131 : vector<2x32xf32>
    %133 = arith.truncf %53 : vector<2x32xf32> to vector<2x32xbf16>
    %cst_119 = arith.constant dense<0.000000e+00> : vector<2x32xf32>
    %134 = tpu.matmul %133, %21, %cst_119 {dimension_numbers = #tpu.dot_dimension_numbers<[1], [0], [0], [1], [0, 0, 1, 1], [], []>} : vector<2x32xbf16>, vector<32x32xbf16>, vector<2x32xf32> -> vector<2x32xf32>
    %135 = arith.addf %132, %134 : vector<2x32xf32>
    %136 = vector.broadcast %24 : vector<1x32xf32> to vector<2x32xf32>
    %137 = arith.addf %135, %136 : vector<2x32xf32>
    %138 = arith.negf %137 : vector<2x32xf32>
    %139 = math.exp %138 : vector<2x32xf32>
    %cst_120 = arith.constant 1.000000e+00 : f32
    %140 = vector.broadcast %cst_120 : f32 to vector<2x32xf32>
    %141 = arith.addf %140, %139 : vector<2x32xf32>
    %142 = arith.divf %140, %141 : vector<2x32xf32>
    %cst_121 = arith.constant dense<0.000000e+00> : vector<2x32xf32>
    %143 = tpu.matmul %49, %16, %cst_121 {dimension_numbers = #tpu.dot_dimension_numbers<[1], [0], [0], [1], [0, 0, 1, 1], [], []>} : vector<2x16xbf16>, vector<16x32xbf16>, vector<2x32xf32> -> vector<2x32xf32>
    %144 = arith.truncf %128 : vector<2x64xf32> to vector<2x64xbf16>
    %cst_122 = arith.constant dense<0.000000e+00> : vector<2x32xf32>
    %145 = tpu.matmul %144, %19, %cst_122 {dimension_numbers = #tpu.dot_dimension_numbers<[1], [0], [0], [1], [0, 0, 1, 1], [], []>} : vector<2x64xbf16>, vector<64x32xbf16>, vector<2x32xf32> -> vector<2x32xf32>
    %146 = arith.addf %143, %145 : vector<2x32xf32>
    %147 = arith.truncf %53 : vector<2x32xf32> to vector<2x32xbf16>
    %cst_123 = arith.constant dense<0.000000e+00> : vector<2x32xf32>
    %148 = tpu.matmul %147, %22, %cst_123 {dimension_numbers = #tpu.dot_dimension_numbers<[1], [0], [0], [1], [0, 0, 1, 1], [], []>} : vector<2x32xbf16>, vector<32x32xbf16>, vector<2x32xf32> -> vector<2x32xf32>
    %149 = arith.addf %146, %148 : vector<2x32xf32>
    %150 = vector.broadcast %25 : vector<1x32xf32> to vector<2x32xf32>
    %151 = arith.addf %149, %150 : vector<2x32xf32>
    %152 = arith.negf %151 : vector<2x32xf32>
    %153 = math.exp %152 : vector<2x32xf32>
    %cst_124 = arith.constant 1.000000e+00 : f32
    %154 = vector.broadcast %cst_124 : f32 to vector<2x32xf32>
    %155 = arith.addf %154, %153 : vector<2x32xf32>
    %156 = arith.divf %154, %155 : vector<2x32xf32>
    %cst_125 = arith.constant dense<0.000000e+00> : vector<2x32xf32>
    %157 = tpu.matmul %49, %17, %cst_125 {dimension_numbers = #tpu.dot_dimension_numbers<[1], [0], [0], [1], [0, 0, 1, 1], [], []>} : vector<2x16xbf16>, vector<16x32xbf16>, vector<2x32xf32> -> vector<2x32xf32>
    %158 = arith.truncf %128 : vector<2x64xf32> to vector<2x64xbf16>
    %cst_126 = arith.constant dense<0.000000e+00> : vector<2x32xf32>
    %159 = tpu.matmul %158, %20, %cst_126 {dimension_numbers = #tpu.dot_dimension_numbers<[1], [0], [0], [1], [0, 0, 1, 1], [], []>} : vector<2x64xbf16>, vector<64x32xbf16>, vector<2x32xf32> -> vector<2x32xf32>
    %160 = arith.addf %157, %159 : vector<2x32xf32>
    %161 = vector.broadcast %26 : vector<1x32xf32> to vector<2x32xf32>
    %162 = arith.addf %160, %161 : vector<2x32xf32>
    %163 = arith.truncf %53 : vector<2x32xf32> to vector<2x32xbf16>
    %cst_127 = arith.constant dense<0.000000e+00> : vector<2x32xf32>
    %164 = tpu.matmul %163, %23, %cst_127 {dimension_numbers = #tpu.dot_dimension_numbers<[1], [0], [0], [1], [0, 0, 1, 1], [], []>} : vector<2x32xbf16>, vector<32x32xbf16>, vector<2x32xf32> -> vector<2x32xf32>
    %165 = vector.broadcast %27 : vector<1x32xf32> to vector<2x32xf32>
    %166 = arith.addf %164, %165 : vector<2x32xf32>
    %167 = arith.mulf %142, %166 : vector<2x32xf32>
    %168 = arith.addf %162, %167 : vector<2x32xf32>
    %169 = math.tanh %168 : vector<2x32xf32>
    %cst_128 = arith.constant 1.000000e+00 : f32
    %170 = vector.broadcast %cst_128 : f32 to vector<2x32xf32>
    %171 = arith.subf %170, %156 : vector<2x32xf32>
    %172 = arith.mulf %171, %169 : vector<2x32xf32>
    %173 = arith.mulf %156, %53 : vector<2x32xf32>
    %174 = arith.addf %172, %173 : vector<2x32xf32>
    %cst_129 = arith.constant dense<0.000000e+00> : vector<2x32xf32>
    %175 = tpu.matmul %49, %34, %cst_129 {dimension_numbers = #tpu.dot_dimension_numbers<[1], [0], [0], [1], [0, 0, 1, 1], [], []>} : vector<2x16xbf16>, vector<16x32xbf16>, vector<2x32xf32> -> vector<2x32xf32>
    %176 = vector.broadcast %35 : vector<1x32xf32> to vector<2x32xf32>
    %177 = arith.addf %175, %176 : vector<2x32xf32>
    %178 = arith.truncf %52 : vector<2x32xf32> to vector<2x32xbf16>
    %cst_130 = arith.constant dense<0.000000e+00> : vector<2x32xf32>
    %179 = tpu.matmul %178, %36, %cst_130 {dimension_numbers = #tpu.dot_dimension_numbers<[1], [0], [0], [1], [0, 0, 1, 1], [], []>} : vector<2x32xbf16>, vector<32x32xbf16>, vector<2x32xf32> -> vector<2x32xf32>
    %180 = arith.addf %177, %179 : vector<2x32xf32>
    %181 = vector.broadcast %37 : vector<1x32xf32> to vector<2x32xf32>
    %182 = arith.addf %180, %181 : vector<2x32xf32>
    %183 = arith.negf %182 : vector<2x32xf32>
    %184 = math.exp %183 : vector<2x32xf32>
    %cst_131 = arith.constant 1.000000e+00 : f32
    %185 = vector.broadcast %cst_131 : f32 to vector<2x32xf32>
    %186 = arith.addf %185, %184 : vector<2x32xf32>
    %187 = arith.divf %185, %186 : vector<2x32xf32>
    %188 = arith.truncf %187 : vector<2x32xf32> to vector<2x32xbf16>
    %cst_132 = arith.constant dense<0.000000e+00> : vector<2x32xf32>
    %189 = tpu.matmul %188, %38, %cst_132 {dimension_numbers = #tpu.dot_dimension_numbers<[1], [0], [0], [1], [0, 0, 1, 1], [], []>} : vector<2x32xbf16>, vector<32x32xbf16>, vector<2x32xf32> -> vector<2x32xf32>
    %190 = vector.broadcast %39 : vector<1x32xf32> to vector<2x32xf32>
    %191 = arith.addf %189, %190 : vector<2x32xf32>
    %192 = arith.truncf %187 : vector<2x32xf32> to vector<2x32xbf16>
    %cst_133 = arith.constant dense<0.000000e+00> : vector<2x32xf32>
    %193 = tpu.matmul %192, %40, %cst_133 {dimension_numbers = #tpu.dot_dimension_numbers<[1], [0], [0], [1], [0, 0, 1, 1], [], []>} : vector<2x32xbf16>, vector<32x32xbf16>, vector<2x32xf32> -> vector<2x32xf32>
    %194 = vector.broadcast %41 : vector<1x32xf32> to vector<2x32xf32>
    %195 = arith.addf %193, %194 : vector<2x32xf32>
    %cst_134 = arith.constant 5.000000e-01 : f32
    %196 = vector.broadcast %cst_134 : f32 to vector<2x32xf32>
    %197 = arith.mulf %196, %195 : vector<2x32xf32>
    %198 = math.exp %197 : vector<2x32xf32>
    %199 = arith.mulf %198, %51 : vector<2x32xf32>
    %200 = arith.addf %191, %199 : vector<2x32xf32>
    %201 = arith.truncf %200 : vector<2x32xf32> to vector<2x32xbf16>
    %cst_135 = arith.constant dense<0.000000e+00> : vector<2x32xf32>
    %202 = tpu.matmul %201, %42, %cst_135 {dimension_numbers = #tpu.dot_dimension_numbers<[1], [0], [0], [1], [0, 0, 1, 1], [], []>} : vector<2x32xbf16>, vector<32x32xbf16>, vector<2x32xf32> -> vector<2x32xf32>
    %203 = vector.broadcast %43 : vector<1x32xf32> to vector<2x32xf32>
    %204 = arith.addf %202, %203 : vector<2x32xf32>
    %205 = arith.truncf %174 : vector<2x32xf32> to vector<2x32xbf16>
    %cst_136 = arith.constant dense<0.000000e+00> : vector<2x32xf32>
    %206 = tpu.matmul %205, %44, %cst_136 {dimension_numbers = #tpu.dot_dimension_numbers<[1], [0], [0], [1], [0, 0, 1, 1], [], []>} : vector<2x32xbf16>, vector<32x32xbf16>, vector<2x32xf32> -> vector<2x32xf32>
    %207 = arith.addf %204, %206 : vector<2x32xf32>
    %208 = vector.broadcast %45 : vector<1x32xf32> to vector<2x32xf32>
    %209 = arith.addf %207, %208 : vector<2x32xf32>
    %210 = math.tanh %209 : vector<2x32xf32>
    %211 = arith.truncf %210 : vector<2x32xf32> to vector<2x32xbf16>
    %cst_137 = arith.constant dense<0.000000e+00> : vector<2x32xf32>
    %212 = tpu.matmul %211, %46, %cst_137 {dimension_numbers = #tpu.dot_dimension_numbers<[1], [0], [0], [1], [0, 0, 1, 1], [], []>} : vector<2x32xbf16>, vector<32x32xbf16>, vector<2x32xf32> -> vector<2x32xf32>
    %213 = vector.broadcast %47 : vector<1x32xf32> to vector<2x32xf32>
    %214 = arith.addf %212, %213 : vector<2x32xf32>
    %cst_138 = arith.constant dense<0xFF800000> : vector<2xf32>
    %215 = vector.multi_reduction <maximumf>, %214, %cst_138 [1] : vector<2x32xf32> to vector<2xf32>
    %216 = vector.shape_cast %215 : vector<2xf32> to vector<2x1xf32>
    %217 = vector.broadcast %216 : vector<2x1xf32> to vector<2x32xf32>
    %218 = arith.subf %214, %217 : vector<2x32xf32>
    %219 = math.exp %218 : vector<2x32xf32>
    %cst_139 = arith.constant dense<0.000000e+00> : vector<2xf32>
    %220 = vector.multi_reduction <add>, %219, %cst_139 [1] : vector<2x32xf32> to vector<2xf32>
    %221 = vector.shape_cast %220 : vector<2xf32> to vector<2x1xf32>
    %222 = math.log %221 : vector<2x1xf32>
    %223 = arith.addf %216, %222 : vector<2x1xf32>
    %224 = vector.broadcast %223 : vector<2x1xf32> to vector<2x32xf32>
    %225 = arith.subf %214, %224 : vector<2x32xf32>
    %226 = math.exp %195 : vector<2x32xf32>
    %227 = arith.mulf %191, %191 : vector<2x32xf32>
    %228 = arith.addf %226, %227 : vector<2x32xf32>
    %229 = arith.subf %228, %195 : vector<2x32xf32>
    %cst_140 = arith.constant 1.000000e+00 : f32
    %230 = vector.broadcast %cst_140 : f32 to vector<2x32xf32>
    %231 = arith.subf %229, %230 : vector<2x32xf32>
    %cst_141 = arith.constant dense<0.000000e+00> : vector<2xf32>
    %232 = vector.multi_reduction <add>, %231, %cst_141 [1] : vector<2x32xf32> to vector<2xf32>
    %233 = vector.shape_cast %232 : vector<2xf32> to vector<2x1xf32>
    %cst_142 = arith.constant 5.000000e-01 : f32
    %234 = vector.broadcast %cst_142 : f32 to vector<2x1xf32>
    %235 = arith.mulf %234, %233 : vector<2x1xf32>
    %c0_143 = arith.constant 0 : index
    %c0_144 = arith.constant 0 : index
    %236 = vector.load %arg53[%c0_143, %c0_144] : memref<2x32xf32, #tpu.memory_space<vmem>>, vector<2x32xf32>
    tpu.vector_store %arg53[%c0_143, %c0_144], %90 {strides = array<i32>} : memref<2x32xf32, #tpu.memory_space<vmem>>, vector<2x32xf32>,
    %c0_145 = arith.constant 0 : index
    %c0_146 = arith.constant 0 : index
    %237 = vector.load %arg54[%c0_145, %c0_146] : memref<2x32xf32, #tpu.memory_space<vmem>>, vector<2x32xf32>
    tpu.vector_store %arg54[%c0_145, %c0_146], %174 {strides = array<i32>} : memref<2x32xf32, #tpu.memory_space<vmem>>, vector<2x32xf32>,
    %c0_147 = arith.constant 0 : index
    %c0_148 = arith.constant 0 : index
    %c0_149 = arith.constant 0 : index
    %238 = vector.load %arg48[%c0_147, %c0_148, %c0_149] : memref<1x2x32xf32, #tpu.memory_space<vmem>>, vector<1x2x32xf32>
    %239 = vector.shape_cast %238 : vector<1x2x32xf32> to vector<2x32xf32>
    %240 = vector.shape_cast %225 : vector<2x32xf32> to vector<1x2x32xf32>
    tpu.vector_store %arg48[%c0_147, %c0_148, %c0_149], %240 {strides = array<i32>} : memref<1x2x32xf32, #tpu.memory_space<vmem>>, vector<1x2x32xf32>,
    %c0_150 = arith.constant 0 : index
    %c0_151 = arith.constant 0 : index
    %c0_152 = arith.constant 0 : index
    %241 = vector.load %arg49[%c0_150, %c0_151, %c0_152] : memref<1x2x32xf32, #tpu.memory_space<vmem>>, vector<1x2x32xf32>
    %242 = vector.shape_cast %241 : vector<1x2x32xf32> to vector<2x32xf32>
    %243 = vector.shape_cast %90 : vector<2x32xf32> to vector<1x2x32xf32>
    tpu.vector_store %arg49[%c0_150, %c0_151, %c0_152], %243 {strides = array<i32>} : memref<1x2x32xf32, #tpu.memory_space<vmem>>, vector<1x2x32xf32>,
    %c0_153 = arith.constant 0 : index
    %c0_154 = arith.constant 0 : index
    %c0_155 = arith.constant 0 : index
    %244 = vector.load %arg50[%c0_153, %c0_154, %c0_155] : memref<1x2x32xf32, #tpu.memory_space<vmem>>, vector<1x2x32xf32>
    %245 = vector.shape_cast %244 : vector<1x2x32xf32> to vector<2x32xf32>
    %246 = vector.shape_cast %174 : vector<2x32xf32> to vector<1x2x32xf32>
    tpu.vector_store %arg50[%c0_153, %c0_154, %c0_155], %246 {strides = array<i32>} : memref<1x2x32xf32, #tpu.memory_space<vmem>>, vector<1x2x32xf32>,
    %c0_156 = arith.constant 0 : index
    %c0_157 = arith.constant 0 : index
    %c0_158 = arith.constant 0 : index
    %247 = vector.load %arg51[%c0_156, %c0_157, %c0_158] : memref<1x2x32xf32, #tpu.memory_space<vmem>>, vector<1x2x32xf32>
    %248 = vector.shape_cast %247 : vector<1x2x32xf32> to vector<2x32xf32>
    %249 = vector.shape_cast %200 : vector<2x32xf32> to vector<1x2x32xf32>
    tpu.vector_store %arg51[%c0_156, %c0_157, %c0_158], %249 {strides = array<i32>} : memref<1x2x32xf32, #tpu.memory_space<vmem>>, vector<1x2x32xf32>,
    %c0_159 = arith.constant 0 : index
    %c0_160 = arith.constant 0 : index
    %c0_161 = arith.constant 0 : index
    %250 = vector.load %arg52[%c0_159, %c0_160, %c0_161] : memref<1x2x1xf32, #tpu.memory_space<vmem>>, vector<1x2x1xf32>
    %251 = vector.shape_cast %250 : vector<1x2x1xf32> to vector<2x1xf32>
    %252 = vector.shape_cast %235 : vector<2x1xf32> to vector<1x2x1xf32>
    tpu.vector_store %arg52[%c0_159, %c0_160, %c0_161], %252 {strides = array<i32>} : memref<1x2x1xf32, #tpu.memory_space<vmem>>, vector<1x2x1xf32>,
    return
  }
  func.func @transform_0(%arg0: i32) -> (i32, i32, i32) {
    %c0_i32 = arith.constant 0 : i32
    %c0_i32_0 = arith.constant 0 : i32
    %c0_i32_1 = arith.constant 0 : i32
    return %arg0, %c0_i32, %c0_i32_0 : i32, i32, i32
  }
  func.func @transform_1(%arg0: i32) -> (i32, i32, i32) {
    %c0_i32 = arith.constant 0 : i32
    %c0_i32_0 = arith.constant 0 : i32
    %c0_i32_1 = arith.constant 0 : i32
    %c0_i32_2 = arith.constant 0 : i32
    return %c0_i32, %c0_i32_0, %c0_i32_1 : i32, i32, i32
  }
  func.func @transform_2(%arg0: i32) -> (i32, i32) {
    %c0_i32 = arith.constant 0 : i32
    %c0_i32_0 = arith.constant 0 : i32
    %c0_i32_1 = arith.constant 0 : i32
    return %c0_i32, %c0_i32_0 : i32, i32
  }
  func.func @transform_3(%arg0: i32) -> (i32, i32, i32) {
    %c0_i32 = arith.constant 0 : i32
    %c0_i32_0 = arith.constant 0 : i32
    %c0_i32_1 = arith.constant 0 : i32
    return %arg0, %c0_i32, %c0_i32_0 : i32, i32, i32
  }
  func.func @transform_4(%arg0: i32) -> (i32, i32) {
    %c0_i32 = arith.constant 0 : i32
    %c0_i32_0 = arith.constant 0 : i32
    %c0_i32_1 = arith.constant 0 : i32
    return %c0_i32, %c0_i32_0 : i32, i32
  }
  func.func @transform_5(%arg0: i32) -> (i32, i32) {
    %c0_i32 = arith.constant 0 : i32
    %c0_i32_0 = arith.constant 0 : i32
    %c0_i32_1 = arith.constant 0 : i32
    return %c0_i32, %c0_i32_0 : i32, i32
  }
  func.func @transform_6(%arg0: i32) -> (i32, i32) {
    %c0_i32 = arith.constant 0 : i32
    %c0_i32_0 = arith.constant 0 : i32
    %c0_i32_1 = arith.constant 0 : i32
    return %c0_i32, %c0_i32_0 : i32, i32
  }
  func.func @transform_7(%arg0: i32) -> (i32, i32) {
    %c0_i32 = arith.constant 0 : i32
    %c0_i32_0 = arith.constant 0 : i32
    %c0_i32_1 = arith.constant 0 : i32
    return %c0_i32, %c0_i32_0 : i32, i32
  }
  func.func @transform_8(%arg0: i32) -> (i32, i32) {
    %c0_i32 = arith.constant 0 : i32
    %c0_i32_0 = arith.constant 0 : i32
    %c0_i32_1 = arith.constant 0 : i32
    return %c0_i32, %c0_i32_0 : i32, i32
  }
  func.func @transform_9(%arg0: i32) -> (i32, i32) {
    %c0_i32 = arith.constant 0 : i32
    %c0_i32_0 = arith.constant 0 : i32
    %c0_i32_1 = arith.constant 0 : i32
    return %c0_i32, %c0_i32_0 : i32, i32
  }
  func.func @transform_10(%arg0: i32) -> (i32, i32) {
    %c0_i32 = arith.constant 0 : i32
    %c0_i32_0 = arith.constant 0 : i32
    %c0_i32_1 = arith.constant 0 : i32
    return %c0_i32, %c0_i32_0 : i32, i32
  }
  func.func @transform_11(%arg0: i32) -> (i32, i32) {
    %c0_i32 = arith.constant 0 : i32
    %c0_i32_0 = arith.constant 0 : i32
    %c0_i32_1 = arith.constant 0 : i32
    return %c0_i32, %c0_i32_0 : i32, i32
  }
  func.func @transform_12(%arg0: i32) -> (i32, i32) {
    %c0_i32 = arith.constant 0 : i32
    %c0_i32_0 = arith.constant 0 : i32
    %c0_i32_1 = arith.constant 0 : i32
    return %c0_i32, %c0_i32_0 : i32, i32
  }
  func.func @transform_13(%arg0: i32) -> (i32, i32) {
    %c0_i32 = arith.constant 0 : i32
    %c0_i32_0 = arith.constant 0 : i32
    %c0_i32_1 = arith.constant 0 : i32
    return %c0_i32, %c0_i32_0 : i32, i32
  }
  func.func @transform_14(%arg0: i32) -> (i32, i32) {
    %c0_i32 = arith.constant 0 : i32
    %c0_i32_0 = arith.constant 0 : i32
    %c0_i32_1 = arith.constant 0 : i32
    return %c0_i32, %c0_i32_0 : i32, i32
  }
  func.func @transform_15(%arg0: i32) -> (i32, i32) {
    %c0_i32 = arith.constant 0 : i32
    %c0_i32_0 = arith.constant 0 : i32
    %c0_i32_1 = arith.constant 0 : i32
    return %c0_i32, %c0_i32_0 : i32, i32
  }
  func.func @transform_16(%arg0: i32) -> (i32, i32) {
    %c0_i32 = arith.constant 0 : i32
    %c0_i32_0 = arith.constant 0 : i32
    %c0_i32_1 = arith.constant 0 : i32
    return %c0_i32, %c0_i32_0 : i32, i32
  }
  func.func @transform_17(%arg0: i32) -> (i32, i32) {
    %c0_i32 = arith.constant 0 : i32
    %c0_i32_0 = arith.constant 0 : i32
    %c0_i32_1 = arith.constant 0 : i32
    return %c0_i32, %c0_i32_0 : i32, i32
  }
  func.func @transform_18(%arg0: i32) -> (i32, i32) {
    %c0_i32 = arith.constant 0 : i32
    %c0_i32_0 = arith.constant 0 : i32
    %c0_i32_1 = arith.constant 0 : i32
    return %c0_i32, %c0_i32_0 : i32, i32
  }
  func.func @transform_19(%arg0: i32) -> (i32, i32) {
    %c0_i32 = arith.constant 0 : i32
    %c0_i32_0 = arith.constant 0 : i32
    %c0_i32_1 = arith.constant 0 : i32
    return %c0_i32, %c0_i32_0 : i32, i32
  }
  func.func @transform_20(%arg0: i32) -> (i32, i32) {
    %c0_i32 = arith.constant 0 : i32
    %c0_i32_0 = arith.constant 0 : i32
    %c0_i32_1 = arith.constant 0 : i32
    return %c0_i32, %c0_i32_0 : i32, i32
  }
  func.func @transform_21(%arg0: i32) -> (i32, i32) {
    %c0_i32 = arith.constant 0 : i32
    %c0_i32_0 = arith.constant 0 : i32
    %c0_i32_1 = arith.constant 0 : i32
    return %c0_i32, %c0_i32_0 : i32, i32
  }
  func.func @transform_22(%arg0: i32) -> (i32, i32) {
    %c0_i32 = arith.constant 0 : i32
    %c0_i32_0 = arith.constant 0 : i32
    %c0_i32_1 = arith.constant 0 : i32
    return %c0_i32, %c0_i32_0 : i32, i32
  }
  func.func @transform_23(%arg0: i32) -> (i32, i32) {
    %c0_i32 = arith.constant 0 : i32
    %c0_i32_0 = arith.constant 0 : i32
    %c0_i32_1 = arith.constant 0 : i32
    return %c0_i32, %c0_i32_0 : i32, i32
  }
  func.func @transform_24(%arg0: i32) -> (i32, i32) {
    %c0_i32 = arith.constant 0 : i32
    %c0_i32_0 = arith.constant 0 : i32
    %c0_i32_1 = arith.constant 0 : i32
    return %c0_i32, %c0_i32_0 : i32, i32
  }
  func.func @transform_25(%arg0: i32) -> (i32, i32) {
    %c0_i32 = arith.constant 0 : i32
    %c0_i32_0 = arith.constant 0 : i32
    %c0_i32_1 = arith.constant 0 : i32
    return %c0_i32, %c0_i32_0 : i32, i32
  }
  func.func @transform_26(%arg0: i32) -> (i32, i32) {
    %c0_i32 = arith.constant 0 : i32
    %c0_i32_0 = arith.constant 0 : i32
    %c0_i32_1 = arith.constant 0 : i32
    return %c0_i32, %c0_i32_0 : i32, i32
  }
  func.func @transform_27(%arg0: i32) -> (i32, i32) {
    %c0_i32 = arith.constant 0 : i32
    %c0_i32_0 = arith.constant 0 : i32
    %c0_i32_1 = arith.constant 0 : i32
    return %c0_i32, %c0_i32_0 : i32, i32
  }
  func.func @transform_28(%arg0: i32) -> (i32, i32) {
    %c0_i32 = arith.constant 0 : i32
    %c0_i32_0 = arith.constant 0 : i32
    %c0_i32_1 = arith.constant 0 : i32
    return %c0_i32, %c0_i32_0 : i32, i32
  }
  func.func @transform_29(%arg0: i32) -> (i32, i32) {
    %c0_i32 = arith.constant 0 : i32
    %c0_i32_0 = arith.constant 0 : i32
    %c0_i32_1 = arith.constant 0 : i32
    return %c0_i32, %c0_i32_0 : i32, i32
  }
  func.func @transform_30(%arg0: i32) -> (i32, i32) {
    %c0_i32 = arith.constant 0 : i32
    %c0_i32_0 = arith.constant 0 : i32
    %c0_i32_1 = arith.constant 0 : i32
    return %c0_i32, %c0_i32_0 : i32, i32
  }
  func.func @transform_31(%arg0: i32) -> (i32, i32) {
    %c0_i32 = arith.constant 0 : i32
    %c0_i32_0 = arith.constant 0 : i32
    %c0_i32_1 = arith.constant 0 : i32
    return %c0_i32, %c0_i32_0 : i32, i32
  }
  func.func @transform_32(%arg0: i32) -> (i32, i32) {
    %c0_i32 = arith.constant 0 : i32
    %c0_i32_0 = arith.constant 0 : i32
    %c0_i32_1 = arith.constant 0 : i32
    return %c0_i32, %c0_i32_0 : i32, i32
  }
  func.func @transform_33(%arg0: i32) -> (i32, i32) {
    %c0_i32 = arith.constant 0 : i32
    %c0_i32_0 = arith.constant 0 : i32
    %c0_i32_1 = arith.constant 0 : i32
    return %c0_i32, %c0_i32_0 : i32, i32
  }
  func.func @transform_34(%arg0: i32) -> (i32, i32) {
    %c0_i32 = arith.constant 0 : i32
    %c0_i32_0 = arith.constant 0 : i32
    %c0_i32_1 = arith.constant 0 : i32
    return %c0_i32, %c0_i32_0 : i32, i32
  }
  func.func @transform_35(%arg0: i32) -> (i32, i32) {
    %c0_i32 = arith.constant 0 : i32
    %c0_i32_0 = arith.constant 0 : i32
    %c0_i32_1 = arith.constant 0 : i32
    return %c0_i32, %c0_i32_0 : i32, i32
  }
  func.func @transform_36(%arg0: i32) -> (i32, i32) {
    %c0_i32 = arith.constant 0 : i32
    %c0_i32_0 = arith.constant 0 : i32
    %c0_i32_1 = arith.constant 0 : i32
    return %c0_i32, %c0_i32_0 : i32, i32
  }
  func.func @transform_37(%arg0: i32) -> (i32, i32) {
    %c0_i32 = arith.constant 0 : i32
    %c0_i32_0 = arith.constant 0 : i32
    %c0_i32_1 = arith.constant 0 : i32
    return %c0_i32, %c0_i32_0 : i32, i32
  }
  func.func @transform_38(%arg0: i32) -> (i32, i32) {
    %c0_i32 = arith.constant 0 : i32
    %c0_i32_0 = arith.constant 0 : i32
    %c0_i32_1 = arith.constant 0 : i32
    return %c0_i32, %c0_i32_0 : i32, i32
  }
  func.func @transform_39(%arg0: i32) -> (i32, i32) {
    %c0_i32 = arith.constant 0 : i32
    %c0_i32_0 = arith.constant 0 : i32
    %c0_i32_1 = arith.constant 0 : i32
    return %c0_i32, %c0_i32_0 : i32, i32
  }
  func.func @transform_40(%arg0: i32) -> (i32, i32) {
    %c0_i32 = arith.constant 0 : i32
    %c0_i32_0 = arith.constant 0 : i32
    %c0_i32_1 = arith.constant 0 : i32
    return %c0_i32, %c0_i32_0 : i32, i32
  }
  func.func @transform_41(%arg0: i32) -> (i32, i32) {
    %c0_i32 = arith.constant 0 : i32
    %c0_i32_0 = arith.constant 0 : i32
    %c0_i32_1 = arith.constant 0 : i32
    return %c0_i32, %c0_i32_0 : i32, i32
  }
  func.func @transform_42(%arg0: i32) -> (i32, i32) {
    %c0_i32 = arith.constant 0 : i32
    %c0_i32_0 = arith.constant 0 : i32
    %c0_i32_1 = arith.constant 0 : i32
    return %c0_i32, %c0_i32_0 : i32, i32
  }
  func.func @transform_43(%arg0: i32) -> (i32, i32) {
    %c0_i32 = arith.constant 0 : i32
    %c0_i32_0 = arith.constant 0 : i32
    %c0_i32_1 = arith.constant 0 : i32
    return %c0_i32, %c0_i32_0 : i32, i32
  }
  func.func @transform_44(%arg0: i32) -> (i32, i32) {
    %c0_i32 = arith.constant 0 : i32
    %c0_i32_0 = arith.constant 0 : i32
    %c0_i32_1 = arith.constant 0 : i32
    return %c0_i32, %c0_i32_0 : i32, i32
  }
  func.func @transform_45(%arg0: i32) -> (i32, i32) {
    %c0_i32 = arith.constant 0 : i32
    %c0_i32_0 = arith.constant 0 : i32
    %c0_i32_1 = arith.constant 0 : i32
    return %c0_i32, %c0_i32_0 : i32, i32
  }
  func.func @transform_46(%arg0: i32) -> (i32, i32) {
    %c0_i32 = arith.constant 0 : i32
    %c0_i32_0 = arith.constant 0 : i32
    %c0_i32_1 = arith.constant 0 : i32
    return %c0_i32, %c0_i32_0 : i32, i32
  }
  func.func @transform_47(%arg0: i32) -> (i32, i32, i32) {
    %c0_i32 = arith.constant 0 : i32
    %c0_i32_0 = arith.constant 0 : i32
    %c0_i32_1 = arith.constant 0 : i32
    return %arg0, %c0_i32, %c0_i32_0 : i32, i32, i32
  }
  func.func @transform_48(%arg0: i32) -> (i32, i32, i32) {
    %c0_i32 = arith.constant 0 : i32
    %c0_i32_0 = arith.constant 0 : i32
    %c0_i32_1 = arith.constant 0 : i32
    return %arg0, %c0_i32, %c0_i32_0 : i32, i32, i32
  }
  func.func @transform_49(%arg0: i32) -> (i32, i32, i32) {
    %c0_i32 = arith.constant 0 : i32
    %c0_i32_0 = arith.constant 0 : i32
    %c0_i32_1 = arith.constant 0 : i32
    return %arg0, %c0_i32, %c0_i32_0 : i32, i32, i32
  }
  func.func @transform_50(%arg0: i32) -> (i32, i32, i32) {
    %c0_i32 = arith.constant 0 : i32
    %c0_i32_0 = arith.constant 0 : i32
    %c0_i32_1 = arith.constant 0 : i32
    return %arg0, %c0_i32, %c0_i32_0 : i32, i32, i32
  }
  func.func @transform_51(%arg0: i32) -> (i32, i32, i32) {
    %c0_i32 = arith.constant 0 : i32
    %c0_i32_0 = arith.constant 0 : i32
    %c0_i32_1 = arith.constant 0 : i32
    return %arg0, %c0_i32, %c0_i32_0 : i32, i32, i32
  }
}

</mosaic_0001>

<bundles_post_ra>
// kernel: vae_decode.1
= control target key start
LH: loop header
LB: loop body
LE: loop exit
PB: predicated region body
PF: predicated region fallthrough
CT: control target
= control target key end

     0   :  { %s4443_s6 = smov 1   ;;  %s4444_s10 = smov 2   ;;  %s5228_s0 = inlined_call_operand.smem [shape: u32[52], index: -1, kind: input, shape index: {}] }
   0x1   :  { %s4510_s5 = sld [smem:[%s5228_s0]]   ;;  %s4445_s14 = smov 3  }
   0x2   :  { %s4515_s9 = sld [smem:[%s5228_s0 + %s4443_s6]]   ;;  %s4446_s18 = smov 4  }
   0x3   :  { %s4520_s13 = sld [smem:[%s5228_s0 + %s4444_s10]]   ;;  %s4447_s22 = smov 5  }
   0x4   :  { %s4525_s17 = sld [smem:[%s5228_s0 + %s4445_s14]]   ;;  %s4448_s26 = smov 6  }
   0x5   :  { %s4530_s21 = sld [smem:[%s5228_s0 + %s4446_s18]]   ;;  %s4449_s30 = smov 7  }
   0x6   :  { %s4535_s25 = sld [smem:[%s5228_s0 + %s4447_s22]]   ;;  %s4450_s4 = smov 8  }
   0x7   :  { %5264 = sst [smem:[#allocation15_spill]] %s4510_s5  ;;  %s4451_s10 = smov 9  }
   0x8   :  { %5265 = sst [smem:[#allocation16_spill]] %s4515_s9  ;;  %s4452_s15 = smov 10  }
   0x9   :  { %s4540_s29 = sld [smem:[%s5228_s0 + %s4448_s26]]   ;;  %s4453_s20 = smov 11  }
   0xa   :  { %s4545_s3 = sld [smem:[%s5228_s0 + %s4449_s30]]   ;;  %s4454_s26 = smov 12  }
   0xb   :  { %s4550_s8 = sld [smem:[%s5228_s0 + %s4450_s4]]   ;;  %s4455_s1 = smov 13  }
   0xc   :  { %s4555_s14 = sld [smem:[%s5228_s0 + %s4451_s10]]   ;;  %s4456_s7 = smov 14  }
   0xd   :  { %s4560_s19 = sld [smem:[%s5228_s0 + %s4452_s15]]   ;;  %s4457_s15 = smov 15  }
   0xe   :  { %s4565_s24 = sld [smem:[%s5228_s0 + %s4453_s20]]   ;;  %s4458_s22 = smov 16  }
   0xf   :  { %s4570_s30 = sld [smem:[%s5228_s0 + %s4454_s26]]   ;;  %s4459_s28 = smov 17  }
  0x10   :  { %5266 = sst [smem:[#allocation17_spill]] %s4545_s3  ;;  %s4476_s10 = smov 34  }
  0x11   :  { %5267 = sst [smem:[#allocation18_spill]] %s4550_s8  ;;  %s4477_s16 = smov 35  }
  0x12   :  { %s4575_s6 = sld [smem:[%s5228_s0 + %s4455_s1]]   ;;  %s4475_s1 = smov 33  }
  0x13   :  { %s4580_s12 = sld [smem:[%s5228_s0 + %s4456_s7]]   ;;  %s4460_s7 = smov 18  }
  0x14   :  { %5268 = sst [smem:[#allocation19_spill]] %s4565_s24  ;;  %s4478_s23 = smov 36  }
  0x15   :  { %5269 = sst [smem:[#allocation20_spill]] %s4570_s30 }
  0x16   :  { %s4585_s20 = sld [smem:[%s5228_s0 + %s4457_s15]]   ;;  %s4461_s15 = smov 19  }
  0x17   :  { %s4590_s27 = sld [smem:[%s5228_s0 + %s4458_s22]]   ;;  %s4462_s22 = smov 20  }
  0x18   :  { %5270 = sst [smem:[#allocation21_spill]] %s4575_s6 }
  0x19   :  { %5271 = sst [smem:[#allocation22_spill]] %s4580_s12 }
  0x1a   :  { %s4595_s4 = sld [smem:[%s5228_s0 + %s4459_s28]]   ;;  %s4463_s28 = smov 21  }
  0x1b   :  { %s4600_s12 = sld [smem:[%s5228_s0 + %s4460_s7]]   ;;  %s4464_s7 = smov 22  }
  0x1c   :  { %5272 = sst [smem:[#allocation23_spill]] %s4585_s20 }
  0x1d   :  { %5273 = sst [smem:[#allocation24_spill]] %s4590_s27 }
  0x1e   :  { %s4605_s20 = sld [smem:[%s5228_s0 + %s4461_s15]]   ;;  %s4465_s15 = smov 23  }
  0x1f   :  { %s4610_s27 = sld [smem:[%s5228_s0 + %s4462_s22]]   ;;  %s4466_s22 = smov 24  }
  0x20   :  { %5274 = sst [smem:[#allocation25_spill]] %s4595_s4 }
  0x21   :  { %5275 = sst [smem:[#allocation26_spill]] %s4600_s12 }
  0x22   :  { %s4615_s4 = sld [smem:[%s5228_s0 + %s4463_s28]]   ;;  %s4467_s28 = smov 25  }
  0x23   :  { %s4620_s12 = sld [smem:[%s5228_s0 + %s4464_s7]]   ;;  %s4468_s7 = smov 26  }
  0x24   :  { %5276 = sst [smem:[#allocation27_spill]] %s4605_s20 }
  0x25   :  { %5277 = sst [smem:[#allocation28_spill]] %s4610_s27 }
  0x26   :  { %s4625_s20 = sld [smem:[%s5228_s0 + %s4465_s15]]   ;;  %s4469_s15 = smov 27  }
  0x27   :  { %s4630_s27 = sld [smem:[%s5228_s0 + %s4466_s22]]   ;;  %s4470_s22 = smov 28  }
  0x28   :  { %5278 = sst [smem:[#allocation29_spill]] %s4615_s4 }
  0x29   :  { %5279 = sst [smem:[#allocation30_spill]] %s4620_s12 }
  0x2a   :  { %s4635_s4 = sld [smem:[%s5228_s0 + %s4467_s28]]   ;;  %s4471_s28 = smov 29  }
  0x2b   :  { %s4640_s12 = sld [smem:[%s5228_s0 + %s4468_s7]]   ;;  %s4472_s7 = smov 30  }
  0x2c   :  { %5280 = sst [smem:[#allocation31_spill]] %s4625_s20 }
  0x2d   :  { %5281 = sst [smem:[#allocation32_spill]] %s4630_s27 }
  0x2e   :  { %s4645_s20 = sld [smem:[%s5228_s0 + %s4469_s15]]   ;;  %s4473_s15 = smov 31  }
  0x2f   :  { %s4650_s27 = sld [smem:[%s5228_s0 + %s4470_s22]]   ;;  %s4474_s22 = smov 32  }
  0x30   :  { %5282 = sst [smem:[#allocation33_spill]] %s4635_s4 }
  0x31   :  { %5283 = sst [smem:[#allocation34_spill]] %s4640_s12 }
  0x32   :  { %s4655_s4 = sld [smem:[%s5228_s0 + %s4471_s28]]   ;;  %s4483_s28 = smov 41  }
  0x33   :  { %s4660_s12 = sld [smem:[%s5228_s0 + %s4472_s7]]  }
  0x34   :  { %s4665_s30 = sld [smem:[%s5228_s0 + %s4473_s15]]  }
  0x35   :  { %5284 = sst [smem:[#allocation35_spill]] %s4650_s27 }
  0x36   :  { %s3674_s27 = sld [smem:[%s5228_s0 + %s4474_s22]]  }
  0x37   :  { %s4673_s6 = sld [smem:[%s5228_s0 + %s4475_s1]]   ;;  %s4479_s1 = smov 37  }
  0x38   :  { %5285 = sst [smem:[#allocation36_spill]] %s4655_s4 }
  0x39   :  { %5286 = sst [smem:[#allocation37_spill]] %s4660_s12 }
  0x3a   :  { %5287 = sst [smem:[#allocation38_spill]] %s4665_s30 }
  0x3b   :  { %s4678_s12 = sld [smem:[%s5228_s0 + %s4476_s10]]   ;;  %s4480_s10 = smov 38  }
  0x3c   :  { %s4683_s30 = sld [smem:[%s5228_s0 + %s4477_s16]]   ;;  %v109_v0 = vstv %s3674_s27  ;;  %s4481_s16 = smov 39  }
  0x3d   :  { %5288 = sst [smem:[#allocation39_spill]] %s4673_s6  ;;  %110 = vst [vmem:[#allocation4] sm:$0x1] %v109_v0  ;;  %s4484_s27 = smov 42  }
  0x3e   :  { %s4688_s24 = sld [smem:[%s5228_s0 + %s4478_s23]]   ;;  %s4482_s23 = smov 40  }
  0x3f   :  { %s4693_s6 = sld [smem:[%s5228_s0 + %s4479_s1]]  }
  0x40   :  { %s4703_s22 = sld [smem:[%s5228_s0 + %s4481_s16]]   ;;  %s4485_s16 = smov 43  }
  0x41   :  { %5289 = sst [smem:[#allocation40_spill]] %s4678_s12 }
  0x42   :  { %s4698_s12 = sld [smem:[%s5228_s0 + %s4480_s10]]  }
  0x43   :  { %s4708_s1 = sld [smem:[%s5228_s0 + %s4482_s23]]  }
  0x44   :  { %5290 = sst [smem:[#allocation41_spill]] %s4688_s24  ;;  %s4486_s24 = smov 44  }
  0x45   :  { %5291 = sst [smem:[#allocation42_spill]] %s4693_s6  ;;  %s4487_s6 = smov 45  }
  0x46   :  { %5293 = sst [smem:[#allocation44_spill]] %s4703_s22 }
  0x47   :  { %s4713_s10 = sld [smem:[%s5228_s0 + %s4483_s28]]  }
  0x48   :  { %5292 = sst [smem:[#allocation43_spill]] %s4698_s12  ;;  %s4489_s12 = smov 47  }
  0x49   :  { %5294 = sst [smem:[#allocation45_spill]] %s4708_s1 }
  0x4a   :  { %s4718_s15 = sld [smem:[%s5228_s0 + %s4484_s27]]   ;;  %s4488_s27 = smov 46  }
  0x4b   :  { %s4723_s22 = sld [smem:[%s5228_s0 + %s4485_s16]]  }
  0x4c   :  { %s4728_s1 = sld [smem:[%s5228_s0 + %s4486_s24]]   ;;  %s4490_s24 = smov 48  }
  0x4d   :  { %5295 = sst [smem:[#allocation46_spill]] %s4713_s10 }
  0x4e   :  { %s4733_s10 = sld [smem:[%s5228_s0 + %s4487_s6]]   ;;  %s4491_s6 = smov 49  }
  0x50   :  { %5296 = sst [smem:[#allocation47_spill]] %s4718_s15 }
  0x51   :  { %5297 = sst [smem:[#allocation48_spill]] %s4723_s22 }
  0x52   :  { %5298 = sst [smem:[#allocation49_spill]] %s4728_s1 }
  0x53   :  { %s4738_s15 = sld [smem:[%s5228_s0 + %s4488_s27]]   ;;  %s4492_s27 = smov 50  }
  0x54   :  { %5299 = sst [smem:[#allocation50_spill]] %s4733_s10 }
  0x55   :  { %s4743_s22 = sld [smem:[%s5228_s0 + %s4489_s12]]   ;;  %s4493_s12 = smov 51  }
  0x56   :  { %s4748_s1 = sld [smem:[%s5228_s0 + %s4490_s24]]  }
  0x57   :  { %s4753_s10 = sld [smem:[%s5228_s0 + %s4491_s6]]  }
  0x59   :  { %5300 = sst [smem:[#allocation51_spill]] %s4738_s15 }
  0x5a   :  { %s4758_s15 = sld [smem:[%s5228_s0 + %s4492_s27]]  }
  0x5b   :  { %5301 = sst [smem:[#allocation52_spill]] %s4743_s22 }
  0x5c   :  { %5302 = sst [smem:[#allocation53_spill]] %s4748_s1 }
  0x5d   :  { %s4763_s22 = sld [smem:[%s5228_s0 + %s4493_s12]]  }
  0x5e   :  { %111 = vsyncpa [#allocation6], 0 }
  0x5f   :  { %113 = vsyncpa [#allocation6 + $0x1], 0 }
  0x60   :  { %114 = vsyncpa [#allocation8], 0 }
  0x61   :  { %116 = vsyncpa [#allocation8 + $0x1], 0 }
  0x62   :  { %117 = vsyncpa [#allocation11], 0 }
  0x63   :  { %119 = vsyncpa [#allocation11 + $0x1], 0  ;;  %s4765_s24 = smov 0   ;;  %s4767_s23 = smov 0  }
  0x64   :  { %s4769_s26 = smov 0   ;;  %s4771_s6 = smov 0  }
  0x65 LB: > { %s5303_s1 = sld [smem:[#allocation53_spill]]  ;;  %s5304_s8 = sld [smem:[#allocation18_spill]]  ;;  %s4433_s23 = sphi %s4767_s23, %s5364_s23   ;;  %s4429_s24 = sphi %s4765_s24, %s5363_s24   ;;  %s4441_s6 = sphi %s4771_s6, %s5362_s6   ;;  %s4437_s26 = sphi %s4769_s26, %s5365_s26  }
  0x66   : > { %s5305_s5 = sld [smem:[#allocation15_spill]]  ;;  %s5306_s4 = sld [smem:[#allocation36_spill]] }
  0x67   : > { %s5307_s3 = sld [smem:[#allocation17_spill]]  ;;  %s5308_s9 = sld [smem:[#allocation16_spill]] }
  0x68   : > { %5309 = sst [smem:[#allocation54_spill]] %s4429_s24  ;;  %s4786_s0 = sadd.s32 4294967295, %s4441_s6  }
  0x69   : > { %5310 = sst [smem:[#allocation55_spill]] %s4433_s23  ;;  %s5241_s28 = sadd.s32 4294967294, %s4441_s6  }
  0x6a   : > { %5311 = sst [smem:[#allocation56_spill]] %s4437_s26  ;;  %s4790_s2 = sadd.s32 1, %s4441_s6  }
  0x6b   : > { %5312 = sst [smem:[#allocation57_spill]] %s4790_s2  ;;  %s1129_s27 = sadd.s32 1, %s4437_s26 }
  0x6c   : > { %s1126_s7 = ssub.s32 %s4441_s6, %s4790_s2  ;;  %p1139_p0 = scmp.ne.s32.totalorder %s4437_s26, %s4433_s23 }
  0x6d   : > { %p1127_p1 = scmp.eq.s32.totalorder %s1126_s7, 0  ;;  %p1140_p2 = scmp.eq.s32.totalorder %s4786_s0, 3 }
  0x6e   : > { %p1145_p3 = scmp.ne.s32.totalorder %s4433_s23, %s4429_s24  ;;  %p1146_p4 = scmp.eq.s32.totalorder %s5241_s28, 3 }
  0x6f   : > { %s4803_s11 = scalar_select %p1127_p1, %s4437_s26, %s1129_s27  }
  0x70   : > { %p4805_p5 = por %p1140_p2, %p1139_p0  ;;  %p4809_p6 = por %p1146_p4, %p1145_p3 }
  0x71   : > { %5313 = sst [smem:[#allocation58_spill]] %s4803_s11  ;;  %p3698_p7 = scmp.ge.s32.totalorder %s4441_s6, 1 }
  0x72   : > { %s5315_s16 = scalar_select %p4809_p6, 1, 0 }
  0x73   : > { %p1416_p8 = scmp.lt.s32.totalorder %s4441_s6, 5 }
  0x74   : > { %5316 = sst [smem:[#allocation59_spill]] %s5315_s16 }
  0x75   : > { %p1417_p9 = pnand %p3698_p7, %p1416_p8 }
  0x76   : > { %s4816_s18 = sand.u32 (!%p1417_p9), 1, %s4433_s23   ;;  %p1557_p10 = scmp.lt.s32.totalorder (!%p1417_p9), %s4786_s0, 3  ;;  %v4820_v1 = vld [vmem:[%s5308_s9] sm:$0xf] (!%p1417_p9)  ;;  %v4823_v2 = vld [vmem:[%s5308_s9 + $0x4] sm:$0xf] (!%p1417_p9) }
  0x77   : > { %1420 = sbr.rel (%p1417_p9) target bundleno = 2828 (0xb0c), region = 208  ;;  %s4826_s27 = sshll.u32 (!%p1417_p9), %s4816_s18, 1  ;;  %v4829_v3 = vld [vmem:[%s4520_s13] sm:$0x3] (!%p1417_p9) }
  0x78   : > { %s5249_s2 = scalar_lea.vmem (!%p1417_p9), [#allocation7], %s4826_s27  ;;  %p3705_p11 = scmp.ne.s32.totalorder (!%p1417_p9), %s4786_s0, 0 }
  0x7e   : > { %s4832_s7 = scalar_select %p1557_p10, %s4786_s0, 3 }
  0x7f   : > { %1575 = sbr.rel (%p3705_p11) target bundleno = 411 (0x19b), region = 212  ;;  %vm1576_vm0 = vcmask (!%p3705_p11), 58368   ;;  %v1581_v5 = vunpack.c.l.bf16 (!%p3705_p11), %v4820_v1  ;;  %vm1598_vm1 = vcmask (!%p3705_p11), 523520   ;;  %vm1583_vm2 = vcmask (!%p3705_p11), 261120  }
  0x80   : > { %s1559_s28 = scalar_lea.vmem %s5305_s5, %s4832_s7  ;;  %s3703_s11 = sshll.u32 %s4832_s7, 1  ;;  %v1577_v4 = vsel (!%p3705_p11), %vm1576_vm0, %v4829_v3, 0.0  ;;  %v1582_v6 = vunpack.c.l.bf16 (!%p3705_p11), %v4823_v2  ;;  %vm1638_vm3 = vcmask (!%p3705_p11), 1041409   ;;  %vm1641_vm4 = vcmask (!%p3705_p11), 254976  }
  0x81   : > { %s4838_s26 = scalar_lea.vmem %s4525_s17, %s3703_s11  ;;  %s4841_s23 = scalar_lea.vmem %s4763_s22, %s3703_s11  ;;  %1578 = vadd.xlane.f32.xlu0 (!%p3705_p11), %v1577_v4  ;;  %v1599_v7 = vsel (!%p3705_p11), %vm1598_vm1, %v1581_v5, 0.0  ;;  %v1584_v8 = vsel (!%p3705_p11), %vm1583_vm2, %v1581_v5, 0.0 }
  0x82   : > { %v1606_v9 = vsel (!%p3705_p11), %vm1598_vm1, %v1582_v6, 0.0  ;;  %v1591_v10 = vsel (!%p3705_p11), %vm1583_vm2, %v1582_v6, 0.0  ;;  %v1600_v11 = vrot.slane (!%p3705_p11), %v1599_v7, 4  ;;  %v1585_v12 = vrot.slane (!%p3705_p11), %v1584_v8, 4  ;;  %s4494_s11 = smov (!%p3705_p11), 96  }
  0x83   : > { %v1607_v13 = vrot.slane (!%p3705_p11), %v1606_v9, 4  ;;  %v1592_v14 = vrot.slane (!%p3705_p11), %v1591_v10, 4 }
  0x84   : > { %v1601_v15 = vadd.f32 (!%p3705_p11), %v1600_v11, %v1599_v7  ;;  %v1586_v16 = vadd.f32 (!%p3705_p11), %v1585_v12, %v1584_v8 }
  0x85   : > { %v1608_v17 = vadd.f32 (!%p3705_p11), %v1607_v13, %v1606_v9  ;;  %v1593_v18 = vadd.f32 (!%p3705_p11), %v1592_v14, %v1591_v10 }
  0x86   : > { %v1602_v19 = vrot.slane %v1601_v15, 2  ;;  %v1587_v20 = vrot.slane %v1586_v16, 2 }
  0x87   : > { %v1609_v22 = vrot.slane %v1608_v17, 2  ;;  %v1594_v23 = vrot.slane %v1593_v18, 2 }
  0x88   : > { %v1603_v25 = vadd.f32 %v1602_v19, %v1601_v15  ;;  %v1588_v26 = vadd.f32 %v1587_v20, %v1586_v16 }
  0x89   : > { %v1610_v28 = vadd.f32 %v1609_v22, %v1608_v17  ;;  %v1595_v29 = vadd.f32 %v1594_v23, %v1593_v18 }
  0x8a   : > { %v1604_v30 = vrot.slane %v1603_v25, 1  ;;  %v1589_v31 = vrot.slane %v1588_v26, 1 }
  0x8b   : > { %v1611_v32 = vrot.slane %v1610_v28, 1  ;;  %v1596_v33 = vrot.slane %v1595_v29, 1 }
  0x8c   : > { %v1605_v34 = vadd.f32 %v1604_v30, %v1603_v25  ;;  %v1590_v35 = vadd.f32 %v1589_v31, %v1588_v26 }
  0x8d   : > { %v1612_v36 = vadd.f32 %v1611_v32, %v1610_v28  ;;  %v1597_v37 = vadd.f32 %v1596_v33, %v1595_v29 }
 0x10e   : > { %v1579_v21 = vpop.xlane.xlu0 %1578 }
 0x10f   : > { %v1580_v24 = vmax.f32 %v1579_v21, 1.0 }
 0x111   : > { %v1614_v27 = vrot.slane %v1580_v24, 1  ;;  %4192 = vrcp.f32 %v1580_v24 }
 0x113   : > { %4194 = vrcp.f32 %v1614_v27 }
 0x11b   : > { %v4193_v38 = vpop.eup %4192 }
 0x11c   : > { %v1621_v39 = vmul.f32 %v4193_v38, %v1605_v34  ;;  %v1618_v40 = vmul.f32 %v4193_v38, %v1590_v35 }
 0x11d   : > { %v4195_v41 = vpop.eup %4194 }
 0x11e   : > { %1625 = vrot.lane.b32.xlu1 %v1621_v39, %s4494_s11  ;;  %v1622_v42 = vmul.f32 %v4195_v41, %v1612_v36  ;;  %v1620_v43 = vmul.f32 %v4195_v41, %v1597_v37 }
 0x120   : > { %1627 = vrot.lane.b32.xlu0 %v1622_v42, %s4494_s11 }
 0x190   : > { %v1626_v44 = vpop.permute.xlu1 %1625 }
 0x191   : > { %v1631_v46 = vadd.f32 %v1626_v44, %v1618_v40 }
 0x192   : > { %v1628_v45 = vpop.permute.xlu0 %1627 }
 0x193   : > { %v1632_v47 = vadd.f32 %v1628_v45, %v1620_v43  ;;  %v1633_v49 = vmul.f32 0.5, %v1631_v46 }
 0x195   : > { %v1634_v48 = vmul.f32 0.5, %v1632_v47 }
 0x197   : > { %v1637_v50 = vrot.slane %v1634_v48, 7 }
 0x199   : > { %v1639_v51 = vsel %vm1638_vm3, %v1637_v50, %v1633_v49 }
 0x19a   : > { %1642 = vst.msk [vmem:[#allocation2] sm:$0x3] %vm1641_vm4, %v1639_v51  ;;  %1643 = vst.msk [vmem:[#allocation3] sm:$0x3] %vm1641_vm4, %v1639_v51 }
 0x19b PF: > { %v4196_v52 = vld [vmem:[%s5307_s3] sm:$0xff]   ;;  %v4495_v53 = vmov 0.0   ;;  %vm4496_vm5 = vmmov 0   ;;  %v4198_v55 = vld [vmem:[%s5307_s3 + $0x8] sm:$0xff]   ;;  %vm1828_vm6 = vcmask 130048   ;;  %vm1778_vm7 = vcmask 261120  }
 0x19c   : > { %3887 = vmatprep.subr.bf16.mxu0 %v4495_v53  ;;  %3895 = vmatprep.subr.bf16.mxu1 %v4495_v53  ;;  %v4197_v54 = vld [vmem:[%s4530_s21] sm:$0xff]   ;;  %v4201_v61 = vld [vmem:[%s5304_s8 + $0x8] sm:$0xff]   ;;  %v4209_v7 = vld [vmem:[%s5306_s4 + $0x10] sm:$0xff]   ;;  %v3732_v10 = vcombine.low %v4820_v1, %v4823_v2  ;;  %vm2233_vm8 = vcmask 523264   ;;  %s5318_s7 = sld [smem:[#allocation21_spill]]  ;;  %s5319_s11 = sld [smem:[#allocation20_spill]] }
 0x19d   : > { %3888 = vmatpush3.bf16.msra.mxu0 %v4196_v52  ;;  %3897 = vmatprep.mubr.msk.bf16.mxu1 %vm4496_vm5, %v4495_v53  ;;  %v4862_v56 = vld [vmem:[%s1559_s28] sm:$0x1]  ;;  %v4204_v0 = vld [vmem:[%s4555_s14 + $0x8] sm:$0xff]   ;;  %v4210_v9 = vld [vmem:[%s5306_s4 + $0x18] sm:$0xff]   ;;  %s5317_s28 = sld [smem:[#allocation19_spill]]  ;;  %vm3352_vm9 = vcmask 254976  }
 0x19e   : > { %3896 = vmatpush3.bf16.msra.mxu1 %v4197_v54  ;;  %3889 = vmatprep.subr.bf16.mxu0 %v4495_v53  ;;  %v4199_v58 = vld [vmem:[%s5304_s8] sm:$0xff]   ;;  %v4207_v5 = vld [vmem:[%s5306_s4 + $0x8] sm:$0xff]   ;;  %vm2323_vm10 = vcmask 1041409   ;;  %vm2310_vm11 = vcmp.eq.f32.partialorder %v4829_v3, 0.0  ;;  %vm2327_vm12 = vcmask 58368   ;;  %s5325_s9 = sld [smem:[#allocation25_spill]] }
 0x19f   : > { %3891 = vmatprep.mubr.msk.bf16.mxu0 %vm4496_vm5, %v4495_v53  ;;  %3901 = vmatprep.subr.bf16.mxu1 %v4495_v53  ;;  %v4200_v60 = vld [vmem:[%s4535_s25] sm:$0xff]   ;;  %v4208_v8 = vld [vmem:[%s4645_s20 + $0x8] sm:$0xff]   ;;  %s5329_s24 = sld [smem:[#allocation29_spill]]  ;;  %s5331_s3 = sld [smem:[#allocation39_spill]] }
 0x1a0   : > { %v4203_v62 = vld [vmem:[%s4540_s29] sm:$0xff]   ;;  %s5346_s5 = sld [smem:[#allocation45_spill]]  ;;  %s4498_s8 = smov [#allocation7]  }
 0x1a1   : > { %v4864_v57 = vld [vmem:[#allocation2] sm:$0x3]  ;;  %3890 = vmatpush3.bf16.msra.mxu0 %v4198_v55  ;;  %3898 = vmatmul.mubr.msk.bf16.vlgmr.msra.gmra.mrb[0].mxu1 %vm1828_vm6, %v4862_v56 }
 0x1a2   : > { %v4872_v59 = vpack.c.bf16 %v4864_v57, %v4864_v57  ;;  %3902 = vmatpush3.bf16.msra.mxu1 %v4199_v58  ;;  %3909 = vmatprep.subr.bf16.mxu0 %v4495_v53  ;;  %v4202_v63 = vld [vmem:[%s4555_s14] sm:$0xff]  }
 0x1a3   : > { %3903 = vmatprep.subr.bf16.mxu1 %v4495_v53  ;;  %3905 = vmatprep.mubr.msk.bf16.mxu1 %vm4496_vm5, %v4495_v53  ;;  %v4205_v4 = vld [vmem:[%s5306_s4] sm:$0xff]   ;;  %s5332_s4 = sld [smem:[#allocation24_spill]] }
 0x1a4   : > { %3892 = vmatmul.mubr.msk.bf16.vlgmr.msra.gmra.mrb[0].mxu0 %vm1778_vm7, %v4872_v59  ;;  %v4206_v6 = vld [vmem:[%s4645_s20] sm:$0xff]  }
 0x1a5   : > { %3910 = vmatpush3.bf16.msra.mxu0 %v4200_v60  ;;  %3911 = vmatprep.mubr.msk.bf16.mxu0 %vm4496_vm5, %v4495_v53  ;;  %v3711_v14 = vld [vmem:[%s4560_s19] ss:$0 sm:$0xff]  ;;  %s5330_s16 = smov %s5329_s24 }
 0x1a6   : > { %3904 = vmatpush3.bf16.msra.mxu1 %v4201_v61  ;;  %3921 = vmatprep.subr.bf16.mxu0 %v4495_v53  ;;  %v3718_v26 = vld [vmem:[%s5317_s28] ss:$0 sm:$0xff]  ;;  %s5320_s28 = sld [smem:[#allocation35_spill]] }
 0x1a7   : > { %3915 = vmatprep.subr.bf16.mxu1 %v4495_v53  ;;  %v3723_v45 = vld [vmem:[%s5318_s7] ss:$0 sm:$0xff]  ;;  %s5321_s7 = sld [smem:[#allocation37_spill]] }
 0x1a8   : > { %v3720_v48 = vld [vmem:[%s5319_s11] ss:$0 sm:$0xff]  ;;  %s5322_s11 = sld [smem:[#allocation38_spill]] }
 0x1a9   : > { %3906 = vmatmul.mubr.msk.bf16.vlgmr.msra.gmra.mrb[4].mxu1 %vm1778_vm7, %v4872_v59 }
 0x1aa   : > { %3916 = vmatpush3.bf16.msra.mxu1 %v4203_v62  ;;  %3917 = vmatprep.mubr.msk.bf16.mxu1 %vm4496_vm5, %v4495_v53 }
 0x1ab   : > { %3929 = vmatprep.subr.bf16.mxu1 %v4495_v53 }
 0x1ac   : > { %3912 = vmatmul.mubr.msk.bf16.vlgmr.msra.gmra.mrb[4].mxu0 %vm1828_vm6, %v4862_v56 }
 0x1ad   : > { %3922 = vmatpush3.bf16.msra.mxu0 %v4202_v63  ;;  %3925 = vmatprep.mubr.msk.bf16.mxu0 %vm4496_vm5, %v4495_v53 }
 0x1ae   : > { %3923 = vmatprep.subr.bf16.mxu0 %v4495_v53 }
 0x1b1   : > { %3924 = vmatpush3.bf16.msra.mxu0 %v4204_v0  ;;  %3918 = vmatmul.mubr.msk.bf16.vlgmr.msra.gmra.mrb[8].mxu1 %vm1828_vm6, %v4862_v56 }
 0x1b2   : > { %3937 = vmatprep.subr.bf16.mxu0 %v4495_v53  ;;  %3933 = vmatprep.mubr.msk.bf16.mxu1 %vm4496_vm5, %v4495_v53 }
 0x1b3   : > { %3930 = vmatpush3.bf16.msra.mxu1 %v4206_v6 }
 0x1b4   : > { %3926 = vmatmul.mubr.msk.bf16.vlgmr.msra.gmra.mrb[8].mxu0 %vm1778_vm7, %v4872_v59  ;;  %3931 = vmatprep.subr.bf16.mxu1 %v4495_v53 }
 0x1b5   : > { %3945 = vmatprep.mubr.msk.bf16.mxu0 %vm4496_vm5, %v4495_v53  ;;  %3938 = vmatpush3.bf16.msra.mxu0 %v4205_v4 }
 0x1b6   : > { %3939 = vmatprep.subr.bf16.mxu0 %v4495_v53 }
 0x1b7   : > { %3932 = vmatpush3.bf16.msra.mxu1 %v4208_v8  ;;  %v4497_v8 = vmov 1966171168  }
 0x1b8   : > { %3949 = vmatprep.subr.bf16.mxu1 %v4495_v53 }
 0x1b9   : > { %3940 = vmatpush3.bf16.msra.mxu0 %v4207_v5 }
 0x1ba   : > { %3941 = vmatprep.subr.bf16.mxu0 %v4495_v53 }
 0x1bd   : > { %3942 = vmatpush3.bf16.msra.mxu0 %v4209_v7  ;;  %v1727_v7 = vld [vmem:[#allocation4] sm:$0x1] }
 0x1be   : > { %3943 = vmatprep.subr.bf16.mxu0 %v4495_v53  ;;  %4081 = vpush %v1727_v7 }
 0x1c1   : > { %3944 = vmatpush3.bf16.msra.mxu0 %v4210_v9  ;;  %v2177_v9 = vunpack.c.l.s4 %v4497_v8 }
 0x1c2   : > { %3961 = vmatprep.subr.bf16.mxu0 %v4495_v53 }
 0x1c4   : > { %3946 = vmatmul.mubr.msk.bf16.vlgmr.msra.gmra.mrb[12].mxu0 %vm2233_vm8, %v3732_v10  ;;  %v2179_v10 = vlaneseq }
 0x1c5   : > { %3963 = vmatprep.mubr.msk.bf16.mxu0 %vm4496_vm5, %v4495_v53 }
 0x274   : > { %v1866_v11 = vpop.f32.mrb[0].mxu1 }
 0x275   : > { %v3899_v12 = vpop.f32.mrb[1].mxu1 }
 0x276   : > { %v1869_v13 = vpop.f32.mrb[2].mxu1  ;;  %v4939_v12 = vshrl.u32 %v2179_v10, 7 }
 0x277   : > { %v1816_v15 = vpop.f32.mrb[0].mxu0  ;;  %v3900_v16 = vpop.f32.mrb[3].mxu1  ;;  %v3727_v13 = vld [vmem:[%s5320_s28] ss:$0 sm:$0xff]  ;;  %s4082_s28 = spop %4081 }
 0x278   : > { %v1867_v17 = vadd.f32 %v1866_v11, %v1816_v15  ;;  %v3893_v18 = vpop.f32.mrb[1].mxu0  ;;  %v2178_v11 = vunpack.c.0.s8 %v2177_v9  ;;  %v4216_v9 = vld [vmem:[%s5325_s9 + $0x10] sm:$0xff]  }
 0x279   : > { %v1819_v19 = vpop.f32.mrb[2].mxu0 }
 0x27a   : > { %v1878_v20 = vadd.f32 %v3711_v14, %v1867_v17  ;;  %v3894_v21 = vpop.f32.mrb[3].mxu0  ;;  %v2181_v14 = vsub.s32 %v2178_v11, %v4939_v12  ;;  %v3731_v19 = vld [vmem:[%s5321_s7] ss:$0 sm:$0xff]  ;;  %s5323_s7 = sld [smem:[#allocation22_spill]]  ;;  %v4218_v11 = vld [vmem:[%s5325_s9 + $0x18] sm:$0xff]  }
 0x27c   : > { %v3712_v22 = vmul.f32 -1.442695, %v1878_v20  ;;  %v1931_v23 = vpop.f32.mrb[4].mxu1 }
 0x27d   : > { %v3907_v24 = vpop.f32.mrb[5].mxu1 }
 0x27e   : > { %4245 = vpow2.f32 %v3712_v22  ;;  %v1934_v25 = vpop.f32.mrb[6].mxu1  ;;  %v4945_v22 = vsub.s32 0, %v4939_v12 }
 0x27f   : > { %v1977_v27 = vpop.f32.mrb[4].mxu0  ;;  %v3908_v28 = vpop.f32.mrb[7].mxu1 }
 0x280   : > { %v1978_v29 = vadd.f32 %v1977_v27, %v1931_v23  ;;  %v3913_v30 = vpop.f32.mrb[5].mxu0  ;;  %v4211_v3 = vld [vmem:[%s5323_s7] sm:$0xff]   ;;  %s5327_s7 = sld [smem:[#allocation27_spill]] }
 0x281   : > { %v1980_v31 = vpop.f32.mrb[6].mxu0  ;;  %3962 = vmatpush3.bf16.msra.mxu0 %v4211_v3 }
 0x282   : > { %v1989_v32 = vadd.f32 %v3718_v26, %v1978_v29  ;;  %v3914_v33 = vpop.f32.mrb[7].mxu0  ;;  %3975 = vmatprep.subr.bf16.mxu0 %v4495_v53 }
 0x284   : > { %v3719_v34 = vmul.f32 -1.442695, %v1989_v32  ;;  %v2042_v35 = vpop.f32.mrb[8].mxu1  ;;  %v3738_v32 = vld [vmem:[%s5322_s11] ss:$0 sm:$0xff]  ;;  %s5324_s11 = sld [smem:[#allocation26_spill]]  ;;  %3964 = vmatmul.mubr.msk.bf16.vlgmr.msra.gmra.mrb[16].mxu0 %vm1828_vm6, %v4862_v56 }
 0x285   : > { %v3919_v36 = vpop.f32.mrb[9].mxu1  ;;  %v2043_v50 = vadd.f32 %v3720_v48, %v2042_v35  ;;  %3983 = vmatprep.mubr.msk.bf16.mxu0 %vm4496_vm5, %v4495_v53 }
 0x286   : > { %4247 = vpow2.f32 %v3719_v34  ;;  %v2045_v37 = vpop.f32.mrb[10].mxu1 }
 0x287   : > { %v2100_v38 = vpop.f32.mrb[8].mxu0  ;;  %v3920_v39 = vpop.f32.mrb[11].mxu1 }
 0x288   : > { %v4246_v40 = vpop.eup %4245  ;;  %v3927_v41 = vpop.f32.mrb[9].mxu0  ;;  %v2101_v49 = vadd.f32 %v3723_v45, %v2100_v38  ;;  %v2314_v39 = vand.u32 127, %v2179_v10 }
 0x289   : > { %v1882_v42 = vadd.f32 1.0, %v4246_v40  ;;  %v2103_v43 = vpop.f32.mrb[10].mxu0  ;;  %v2307_v40 = vstv %s4082_s28  ;;  %s5326_s28 = sld [smem:[#allocation28_spill]] }
 0x28a   : > { %v3928_v44 = vpop.f32.mrb[11].mxu0  ;;  %v4217_v8 = vld [vmem:[%s5324_s11 + $0x10] sm:$0xff]   ;;  %v4219_v10 = vld [vmem:[%s5324_s11 + $0x18] sm:$0xff]  }
 0x28b   : > { %4249 = vrcp.f32 %v1882_v42  ;;  %v2317_v42 = vsub.s32 %v2314_v39, %v4939_v12  ;;  %v4223_v39 = vld [vmem:[%s5327_s7 + $0x8] sm:$0xff]  }
 0x290   : > { %v4248_v46 = vpop.eup %4247 }
 0x291   : > { %v1993_v47 = vadd.f32 1.0, %v4248_v46 }
 0x293   : > { %4251 = vrcp.f32 %v1993_v47 }
 0x295   : > { %v4250_v51 = vpop.eup %4249 }
 0x296   : > { %v2106_v52 = vmul.f32 %v4250_v51, %v2101_v49 }
 0x297   : > { %v2271_v4 = vpop.f32.mrb[12].mxu0 }
 0x298   : > { %v2107_v54 = vadd.f32 %v2106_v52, %v2043_v50  ;;  %v3947_v5 = vpop.f32.mrb[13].mxu0  ;;  %v2272_v25 = vadd.f32 %v3731_v19, %v2271_v4  ;;  %v4215_v4 = vld [vmem:[%s5324_s11 + $0x8] sm:$0xff]  }
 0x299   : > { %v2274_v6 = vpop.f32.mrb[14].mxu0 }
 0x29a   : > { %4253 = vtanh.f32 %v2107_v54  ;;  %v2275_v29 = vadd.f32 %v3731_v19, %v2274_v6  ;;  %v4214_v6 = vld [vmem:[%s5325_s9 + $0x8] sm:$0xff]  }
 0x29d   : > { %v4252_v55 = vpop.eup %4251 }
 0x29e   : > { %v2109_v58 = vsub.f32 1.0, %v4252_v55  ;;  %v2111_v61 = vmul.f32 %v4252_v55, %v4864_v57  ;;  %v3948_v57 = vpop.f32.mrb[15].mxu0 }
 0x2a4   : > { %v4254_v60 = vpop.eup %4253 }
 0x2a5   : > { %v2110_v62 = vmul.f32 %v4254_v60, %v2109_v58 }
 0x2a7   : > { %v2112_v63 = vadd.f32 %v2111_v61, %v2110_v62  ;;  %v4213_v61 = vld [vmem:[%s5324_s11] sm:$0xff]  }
 0x2a8   : > { %v4212_v62 = vld [vmem:[%s5325_s9] sm:$0xff]   ;;  %3976 = vmatpush3.bf16.msra.mxu0 %v4213_v61  ;;  %s4291_s9 = sshll.u32 %s4498_s8, 4  ;;  %s4292_s9 = int_to_ptr.vmem [resolvable:$false] %s4291_s9 }
 0x2a9   : > { %3376 = vst.msk [vmem:[#allocation2] sm:$0x3] %vm3352_vm9, %v2112_v63  ;;  %3379 = vst.msk [vmem:[%s5249_s2] sm:$0x3] %vm3352_vm9, %v2112_v63  ;;  %v2113_v0 = vpack.c.bf16 %v2112_v63, %v2112_v63  ;;  %v2348_v63 = vsub.s32 1, %v4939_v12  ;;  %3977 = vmatprep.subr.bf16.mxu0 %v4495_v53  ;;  %v2354_v12 = vunpack.c.l.bf16 %v4823_v2  ;;  %s5328_s2 = sld [smem:[#allocation23_spill]] }
 0x2aa   : > { %s4293_s11 = scalar_lea.vmem %s4292_s9, 64 }
 0x2ab   : > { %3934 = vmatmul.mubr.msk.bf16.vlgmr.msra.gmra.mrb[12].mxu1 %vm1778_vm7, %v2113_v0 }
 0x2ac   : > { %3957 = vmatprep.mubr.msk.bf16.mxu1 %vm4496_vm5, %v4495_v53  ;;  %3950 = vmatpush3.bf16.msra.mxu1 %v4212_v62 }
 0x2ad   : > { %3951 = vmatprep.subr.bf16.mxu1 %v4495_v53  ;;  %3978 = vmatpush3.bf16.msra.mxu0 %v4215_v4 }
 0x2ae   : > { %3979 = vmatprep.subr.bf16.mxu0 %v4495_v53 }
 0x2b0   : > { %3952 = vmatpush3.bf16.msra.mxu1 %v4214_v6 }
 0x2b1   : > { %3953 = vmatprep.subr.bf16.mxu1 %v4495_v53  ;;  %3980 = vmatpush3.bf16.msra.mxu0 %v4217_v8 }
 0x2b2   : > { %3981 = vmatprep.subr.bf16.mxu0 %v4495_v53 }
 0x2b4   : > { %3954 = vmatpush3.bf16.msra.mxu1 %v4216_v9 }
 0x2b5   : > { %3955 = vmatprep.subr.bf16.mxu1 %v4495_v53  ;;  %3982 = vmatpush3.bf16.msra.mxu0 %v4219_v10 }
 0x2b6   : > { %4001 = vmatprep.subr.bf16.mxu0 %v4495_v53 }
 0x2b8   : > { %3956 = vmatpush3.bf16.msra.mxu1 %v4218_v11 }
 0x2b9   : > { %3967 = vmatprep.subr.bf16.mxu1 %v4495_v53 }
 0x37e   : > { %v2169_v15 = vpop.f32.mrb[12].mxu1 }
 0x37f   : > { %v2170_v16 = vadd.f32 %v3727_v13, %v2169_v15  ;;  %v3935_v17 = vpop.f32.mrb[13].mxu1  ;;  %v2353_v13 = vunpack.c.l.bf16 %v4820_v1 }
 0x380   : > { %v2172_v18 = vpop.f32.mrb[14].mxu1 }
 0x381   : > { %v2182_v20 = vrot.slane %v2170_v16, %v2181_v14  ;;  %v3936_v21 = vpop.f32.mrb[15].mxu1 }
 0x383   : > { %v2183_v23 = vcombine.high %v2182_v20, %v2182_v20  ;;  %v2190_v24 = vrot.slane %v2182_v20, %v2181_v14 }
 0x385   : > { %v2281_v26 = vrot.slane %v2190_v24, %v4945_v22  ;;  %v2197_v27 = vrot.slane %v2183_v23, %v2181_v14 }
 0x387   : > { %v2288_v28 = vadd.f32 %v2281_v26, %v2272_v25  ;;  %v2285_v30 = vrot.slane %v2197_v27, %v4945_v22 }
 0x389   : > { %4255 = vtanh.f32 %v2288_v28  ;;  %v2289_v31 = vadd.f32 %v2285_v30, %v2275_v29 }
 0x38b   : > { %4257 = vtanh.f32 %v2289_v31 }
 0x393   : > { %v4256_v33 = vpop.eup %4255 }
 0x394   : > { %v2298_v34 = vmul.f32 %v4256_v33, %v3738_v32 }
 0x395   : > { %v4258_v35 = vpop.eup %4257 }
 0x396   : > { %v2300_v36 = vsel %vm1778_vm7, %v2298_v34, 0.0  ;;  %v2299_v37 = vmul.f32 %v4258_v35, %v3738_v32  ;;  %v4220_v35 = vld [vmem:[%s5326_s28] sm:$0xff]  }
 0x397   : > { %2301 = vadd.xlane.f32.xlu0 %v2300_v36  ;;  %v4221_v36 = vld [vmem:[%s5327_s7] sm:$0xff]  }
 0x398   : > { %v2303_v38 = vsel %vm1778_vm7, %v2299_v37, 0.0 }
 0x39b   : > { %2304 = vadd.xlane.f32.xlu0 %v2303_v38  ;;  %v4222_v38 = vld [vmem:[%s5326_s28 + $0x8] sm:$0xff]  }
 0x424   : > { %v2302_v41 = vpop.xlane.xlu0 %2301 }
 0x425   : > { %v2308_v43 = vadd.f32 %v2307_v40, %v2302_v41 }
 0x427   : > { %v2318_v46 = vrot.slane %v2308_v43, %v2317_v42  ;;  %v4225_v43 = vld [vmem:[%s5327_s7 + $0x10] sm:$0xff]  }
 0x428   : > { %v2305_v44 = vpop.xlane.xlu0 %2304 }
 0x429   : > { %v2309_v45 = vadd.f32 %v2307_v40, %v2305_v44  ;;  %v4990_v40 = vld [vmem:[#allocation3] sm:$0x3]  ;;  %v4226_v44 = vld [vmem:[%s5327_s7 + $0x18] sm:$0xff]  }
 0x42a   : > { %v2492_v41 = vpack.c.bf16 %v4990_v40, %v4990_v40 }
 0x42b   : > { %v2322_v47 = vrot.slane %v2309_v45, %v2317_v42  ;;  %v4224_v42 = vld [vmem:[%s5328_s2] sm:$0xff]   ;;  %s5333_s2 = sld [smem:[#allocation30_spill]] }
 0x42c   : > { %v4227_v45 = vld [vmem:[%s5329_s24] sm:$0xff]   ;;  %s5336_s24 = sld [smem:[#allocation31_spill]] }
 0x42d   : > { %v2324_v48 = vsel %vm2323_vm10, %v2322_v47, %v2318_v46  ;;  %v4232_v46 = vld [vmem:[%s5331_s3] sm:$0xff]   ;;  %v4228_v47 = vld [vmem:[%s5330_s16 + $0x8] sm:$0xff]   ;;  %s5334_s3 = sld [smem:[#allocation44_spill]] }
 0x42e   : > { %v2326_v49 = vsel %vm2310_vm11, -1e+10, %v2324_v48  ;;  %v4229_v48 = vld [vmem:[%s5332_s4] sm:$0xff]   ;;  %s5335_s4 = sld [smem:[#allocation42_spill]] }
 0x42f   : > { %v2328_v50 = vsel %vm2327_vm12, %v2326_v49, -inf }
 0x430   : > { %2329 = vmax.xlane.f32.xlu1 %v2328_v50 }
 0x431   : > { %v4231_v50 = vld [vmem:[%s5333_s2 + $0x8] sm:$0xff]  }
 0x432   : > { %v3749_v9 = vld [vmem:[%s5336_s24] ss:$0 sm:$0xff]  ;;  %s5338_s24 = sld [smem:[#allocation34_spill]] }
 0x433   : > { %v4237_v61 = vld [vmem:[%s5334_s3 + $0x8] sm:$0xff]  }
 0x434   : > { %v4236_v3 = vld [vmem:[%s5335_s4] sm:$0xff]   ;;  %v4238_v62 = vld [vmem:[%s5335_s4 + $0x8] sm:$0xff]   ;;  %s5340_s4 = sld [smem:[#allocation40_spill]] }
 0x4bd   : > { %v2330_v51 = vpop.xlane.xlu1 %2329 }
 0x4be   : > { %v2331_v52 = vsub.f32 %v2326_v49, %v2330_v51  ;;  %v4230_v49 = vld [vmem:[%s5333_s2] sm:$0xff]   ;;  %s5337_s2 = sld [smem:[#allocation32_spill]] }
 0x4bf   : > { %v4233_v51 = vld [vmem:[%s4683_s30] sm:$0xff]  }
 0x4c0   : > { %v2332_v54 = vmul.f32 1.442695, %v2331_v52  ;;  %v4234_v52 = vld [vmem:[%s4683_s30 + $0x8] sm:$0xff]  }
 0x4c2   : > { %4259 = vpow2.f32 %v2332_v54 }
 0x4cc   : > { %v4260_v55 = vpop.eup %4259 }
 0x4cd   : > { %v2334_v58 = vsel %vm2327_vm12, %v4260_v55, 0.0 }
 0x4ce   : > { %2335 = vadd.xlane.f32.xlu1 %v2334_v58 }
 0x55b   : > { %v2336_v60 = vpop.xlane.xlu1 %2335 }
 0x55c   : > { %4261 = vrcp.f32 %v2336_v60  ;;  %v4235_v60 = vld [vmem:[%s5334_s3] sm:$0xff]   ;;  %s5339_s3 = sld [smem:[#allocation33_spill]] }
 0x566   : > { %v4262_v0 = vpop.eup %4261 }
 0x567   : > { %v2338_v5 = vmul.f32 %v4262_v0, %v4260_v55 }
 0x569   : > { %v2349_v57 = vrot.slane %v2338_v5, %v2348_v63  ;;  %v2342_v7 = vrot.slane %v2338_v5, %v4945_v22 }
 0x56b   : > { %2351 = vbcast.lane.b32.xlu1 %v2349_v57, 256  ;;  %2344 = vbcast.lane.b32.xlu0 %v2342_v7, 256 }
 0x5dd   : > { %v2352_v14 = vpop.permute.xlu1 %2351  ;;  %v2345_v15 = vpop.permute.xlu0 %2344 }
 0x5de   : > { %v2356_v16 = vmul.f32 %v2354_v12, %v2352_v14  ;;  %v2355_v17 = vmul.f32 %v2353_v13, %v2345_v15 }
 0x5e0   : > { %v2364_v18 = vsel %vm2233_vm8, %v2356_v16, 0.0  ;;  %v2357_v19 = vsel %vm2233_vm8, %v2355_v17, 0.0 }
 0x5e1   : > { %v2365_v20 = vrot.slane %v2364_v18, 4  ;;  %v2358_v21 = vrot.slane %v2357_v19, 4 }
 0x5e3   : > { %v2366_v22 = vadd.f32 %v2365_v20, %v2364_v18  ;;  %v2359_v23 = vadd.f32 %v2358_v21, %v2357_v19 }
 0x5e5   : > { %v2367_v24 = vrot.slane %v2366_v22, 2  ;;  %v2360_v25 = vrot.slane %v2359_v23, 2 }
 0x5e7   : > { %v2368_v26 = vadd.f32 %v2367_v24, %v2366_v22  ;;  %v2361_v2 = vadd.f32 %v2360_v25, %v2359_v23 }
 0x5e9   : > { %v2369_v27 = vrot.slane %v2368_v26, 1  ;;  %v2362_v1 = vrot.slane %v2361_v2, 1 }
 0x5eb   : > { %v2370_v28 = vadd.f32 %v2369_v27, %v2368_v26  ;;  %v2363_v29 = vadd.f32 %v2362_v1, %v2361_v2  ;;  %v3761_v26 = vld [vmem:[%s5337_s2] ss:$0 sm:$0xff]  ;;  %s5341_s2 = sld [smem:[#allocation41_spill]] }
 0x5ed   : > { %v2372_v30 = vpack.c.bf16 %v2370_v28, %v2370_v28  ;;  %v2371_v31 = vpack.c.bf16 %v2363_v29, %v2363_v29 }
 0x5ef   : > { %v2376_v32 = vunpack.c.l.b16 %v2372_v30  ;;  %v2375_v33 = vunpack.c.l.b16 %v2371_v31 }
 0x5f1   : > { %v2377_v34 = vsel %vm2323_vm10, %v2376_v32, %v2375_v33 }
 0x5f2   : > { %v2378_v37 = vpack.c.b16 %v2377_v34, %v2377_v34 }
 0x5f4   : > { %3958 = vmatmul.mubr.msk.bf16.vlgmr.msra.gmra.mrb[16].mxu1 %vm2233_vm8, %v2378_v37  ;;  %3984 = vmatmul.mubr.msk.bf16.vlgmr.msra.gmra.mrb[20].mxu0 %vm2233_vm8, %v2378_v37 }
 0x5f5   : > { %3968 = vmatpush3.bf16.msra.mxu1 %v4220_v35  ;;  %4002 = vmatpush3.bf16.msra.mxu0 %v4221_v36 }
 0x5f6   : > { %3969 = vmatprep.subr.bf16.mxu1 %v4495_v53  ;;  %4003 = vmatprep.subr.bf16.mxu0 %v4495_v53 }
 0x5f7   : > { %3971 = vmatprep.mubr.msk.bf16.mxu1 %vm4496_vm5, %v4495_v53  ;;  %4009 = vmatprep.mubr.msk.bf16.mxu0 %vm4496_vm5, %v4495_v53 }
 0x5f9   : > { %3970 = vmatpush3.bf16.msra.mxu1 %v4222_v38  ;;  %4004 = vmatpush3.bf16.msra.mxu0 %v4223_v39 }
 0x5fa   : > { %3987 = vmatprep.subr.bf16.mxu1 %v4495_v53  ;;  %4005 = vmatprep.subr.bf16.mxu0 %v4495_v53 }
 0x5fc   : > { %3972 = vmatmul.mubr.msk.bf16.vlgmr.msra.gmra.mrb[20].mxu1 %vm1778_vm7, %v2492_v41 }
 0x5fd   : > { %3988 = vmatpush3.bf16.msra.mxu1 %v4224_v42  ;;  %4006 = vmatpush3.bf16.msra.mxu0 %v4225_v43 }
 0x5fe   : > { %4007 = vmatprep.subr.bf16.mxu0 %v4495_v53  ;;  %3989 = vmatprep.mubr.msk.bf16.mxu1 %vm4496_vm5, %v4495_v53 }
 0x5ff   : > { %3993 = vmatprep.subr.bf16.mxu1 %v4495_v53 }
 0x601   : > { %4008 = vmatpush3.bf16.msra.mxu0 %v4226_v44  ;;  %v3771_v44 = vld [vmem:[%s5338_s24] ss:$0 sm:$0xff]  ;;  %s5344_s24 = sld [smem:[#allocation46_spill]] }
 0x602   : > { %4027 = vmatprep.subr.bf16.mxu0 %v4495_v53 }
 0x604   : > { %4010 = vmatmul.mubr.msk.bf16.vlgmr.msra.gmra.mrb[24].mxu0 %vm2233_vm8, %v2378_v37  ;;  %3990 = vmatmul.mubr.msk.bf16.vlgmr.msra.gmra.mrb[24].mxu1 %vm1828_vm6, %v4862_v56 }
 0x605   : > { %3994 = vmatpush3.bf16.msra.mxu1 %v4227_v45  ;;  %3997 = vmatprep.mubr.msk.bf16.mxu1 %vm4496_vm5, %v4495_v53  ;;  %v3770_v45 = vld [vmem:[%s5339_s3] ss:$0 sm:$0xff]  ;;  %s5342_s3 = sld [smem:[#allocation48_spill]] }
 0x606   : > { %3995 = vmatprep.subr.bf16.mxu1 %v4495_v53  ;;  %4028 = vmatpush3.bf16.msra.mxu0 %v4232_v46 }
 0x607   : > { %4029 = vmatprep.mubr.msk.bf16.mxu0 %vm4496_vm5, %v4495_v53  ;;  %4041 = vmatprep.subr.bf16.mxu0 %v4495_v53 }
 0x609   : > { %3996 = vmatpush3.bf16.msra.mxu1 %v4228_v47 }
 0x60a   : > { %4013 = vmatprep.subr.bf16.mxu1 %v4495_v53 }
 0x60c   : > { %3998 = vmatmul.mubr.msk.bf16.vlgmr.msra.gmra.mrb[28].mxu1 %vm1778_vm7, %v2492_v41  ;;  %4030 = vmatmul.mubr.msk.bf16.vlgmr.msra.gmra.mrb[28].mxu0 %vm1828_vm6, %v4862_v56 }
 0x60d   : > { %4014 = vmatpush3.bf16.msra.mxu1 %v4229_v48  ;;  %4015 = vmatprep.mubr.msk.bf16.mxu1 %vm4496_vm5, %v4495_v53 }
 0x60e   : > { %4019 = vmatprep.subr.bf16.mxu1 %v4495_v53  ;;  %4045 = vmatprep.mubr.msk.bf16.mxu0 %vm4496_vm5, %v4495_v53 }
 0x60f   : > { %4042 = vmatpush3.bf16.msra.mxu0 %v4236_v3 }
 0x610   : > { %4043 = vmatprep.subr.bf16.mxu0 %v4495_v53 }
 0x613   : > { %4044 = vmatpush3.bf16.msra.mxu0 %v4238_v62 }
 0x614   : > { %4016 = vmatmul.mubr.msk.bf16.vlgmr.msra.gmra.mrb[32].mxu1 %vm1828_vm6, %v4862_v56  ;;  %v2486_v56 = vpop.f32.mrb[16].mxu0  ;;  %4057 = vmatprep.subr.bf16.mxu0 %v4495_v53 }
 0x615   : > { %4020 = vmatpush3.bf16.msra.mxu1 %v4230_v49  ;;  %4023 = vmatprep.mubr.msk.bf16.mxu1 %vm4496_vm5, %v4495_v53  ;;  %v3965_v54 = vpop.f32.mrb[17].mxu0 }
 0x616   : > { %4021 = vmatprep.subr.bf16.mxu1 %v4495_v53  ;;  %v2489_v55 = vpop.f32.mrb[18].mxu0 }
 0x617   : > { %v3966_v58 = vpop.f32.mrb[19].mxu0 }
 0x619   : > { %4022 = vmatpush3.bf16.msra.mxu1 %v4231_v50 }
 0x61a   : > { %4033 = vmatprep.subr.bf16.mxu1 %v4495_v53 }
 0x61c   : > { %4024 = vmatmul.mubr.msk.bf16.vlgmr.msra.gmra.mrb[36].mxu1 %vm1778_vm7, %v2492_v41 }
 0x61d   : > { %4034 = vmatpush3.bf16.msra.mxu1 %v4233_v51  ;;  %4037 = vmatprep.mubr.msk.bf16.mxu1 %vm4496_vm5, %v4495_v53 }
 0x61e   : > { %4035 = vmatprep.subr.bf16.mxu1 %v4495_v53 }
 0x621   : > { %4036 = vmatpush3.bf16.msra.mxu1 %v4234_v52 }
 0x622   : > { %4049 = vmatprep.subr.bf16.mxu1 %v4495_v53 }
 0x624   : > { %4038 = vmatmul.mubr.msk.bf16.vlgmr.msra.gmra.mrb[40].mxu1 %vm1778_vm7, %v4872_v59 }
 0x625   : > { %4053 = vmatprep.mubr.msk.bf16.mxu1 %vm4496_vm5, %v4495_v53  ;;  %4050 = vmatpush3.bf16.msra.mxu1 %v4235_v60 }
 0x626   : > { %4051 = vmatprep.subr.bf16.mxu1 %v4495_v53 }
 0x629   : > { %4052 = vmatpush3.bf16.msra.mxu1 %v4237_v61  ;;  %v3781_v61 = vld [vmem:[%s5341_s2] ss:$0 sm:$0xff]  ;;  %s5345_s2 = smov %s5344_s24 }
 0x62a   : > { %4065 = vmatprep.subr.bf16.mxu1 %v4495_v53 }
 0x6c7   : > { %v2440_v59 = vpop.f32.mrb[16].mxu1  ;;  %v2620_v63 = vpop.f32.mrb[20].mxu0 }
 0x6c8   : > { %v2487_v0 = vadd.f32 %v2486_v56, %v2440_v59  ;;  %v3959_v4 = vpop.f32.mrb[17].mxu1  ;;  %v3985_v5 = vpop.f32.mrb[21].mxu0  ;;  %v3775_v56 = vld [vmem:[%s5340_s4] ss:$0 sm:$0xff]  ;;  %s5343_s4 = scalar_lea.vmem [#allocation9], %s4826_s27 }
 0x6c9   : > { %v2443_v6 = vpop.f32.mrb[18].mxu1  ;;  %v2623_v57 = vpop.f32.mrb[22].mxu0 }
 0x6ca   : > { %v3960_v7 = vpop.f32.mrb[19].mxu1  ;;  %v3986_v8 = vpop.f32.mrb[23].mxu0 }
 0x6cf   : > { %v2542_v10 = vpop.f32.mrb[20].mxu1 }
 0x6d0   : > { %v2548_v11 = vadd.f32 %v2542_v10, %v2487_v0  ;;  %v3973_v12 = vpop.f32.mrb[21].mxu1 }
 0x6d1   : > { %v2545_v13 = vpop.f32.mrb[22].mxu1 }
 0x6d2   : > { %v2555_v14 = vadd.f32 %v3749_v9, %v2548_v11  ;;  %v3974_v15 = vpop.f32.mrb[23].mxu1 }
 0x6d3   : > { %v4239_v15 = vld [vmem:[%s5342_s3] sm:$0xff]  }
 0x6d4   : > { %v3750_v16 = vmul.f32 -1.442695, %v2555_v14 }
 0x6d6   : > { %4263 = vpow2.f32 %v3750_v16 }
 0x6d7   : > { %v2796_v17 = vpop.f32.mrb[24].mxu0  ;;  %v2666_v18 = vpop.f32.mrb[24].mxu1 }
 0x6d8   : > { %v2667_v19 = vadd.f32 %v2666_v18, %v2620_v63  ;;  %v4011_v20 = vpop.f32.mrb[25].mxu0  ;;  %v3991_v21 = vpop.f32.mrb[25].mxu1  ;;  %v4241_v18 = vld [vmem:[%s5344_s24] sm:$0xff]   ;;  %s5349_s24 = sld [smem:[#allocation47_spill]] }
 0x6d9   : > { %v2799_v22 = vpop.f32.mrb[26].mxu0  ;;  %v2669_v23 = vpop.f32.mrb[26].mxu1  ;;  %v3787_v20 = vld [vmem:[%s5346_s5] ss:$0 sm:$0xff]  ;;  %s5348_s5 = sld [smem:[#allocation50_spill]] }
 0x6da   : > { %v4012_v24 = vpop.f32.mrb[27].mxu0  ;;  %v3992_v25 = vpop.f32.mrb[27].mxu1 }
 0x6df   : > { %v2718_v2 = vpop.f32.mrb[28].mxu1  ;;  %v2966_v27 = vpop.f32.mrb[28].mxu0 }
 0x6e0   : > { %v4264_v1 = vpop.eup %4263  ;;  %v2724_v28 = vadd.f32 %v2718_v2, %v2667_v19  ;;  %v3999_v29 = vpop.f32.mrb[29].mxu1  ;;  %v2967_v3 = vadd.f32 %v3775_v56, %v2966_v27  ;;  %v4242_v19 = vld [vmem:[%s5345_s2 + $0x8] sm:$0xff]   ;;  %s5350_s2 = sld [smem:[#allocation49_spill]] }
 0x6e1   : > { %v4031_v30 = vpop.f32.mrb[29].mxu0  ;;  %v2721_v31 = vpop.f32.mrb[30].mxu1  ;;  %v2559_v36 = vadd.f32 1.0, %v4264_v1 }
 0x6e2   : > { %v2969_v32 = vpop.f32.mrb[30].mxu0  ;;  %v2731_v33 = vadd.f32 %v3761_v26, %v2724_v28  ;;  %v4000_v34 = vpop.f32.mrb[31].mxu1 }
 0x6e3   : > { %v4032_v35 = vpop.f32.mrb[31].mxu0 }
 0x6e4   : > { %v3762_v37 = vmul.f32 -1.442695, %v2731_v33 }
 0x6e6   : > { %4265 = vpow2.f32 %v3762_v37  ;;  %v3798_v56 = vld [vmem:[%s5350_s2] ss:$0 sm:$0xff]  ;;  %s3389_s2 = sand.u32 1, %s4786_s0  }
 0x6e7   : > { %4267 = vrcp.f32 %v2559_v36  ;;  %v2842_v38 = vpop.f32.mrb[32].mxu1 }
 0x6e8   : > { %v2843_v39 = vadd.f32 %v2842_v38, %v2796_v17  ;;  %v4017_v41 = vpop.f32.mrb[33].mxu1 }
 0x6e9   : > { %v2845_v42 = vpop.f32.mrb[34].mxu1 }
 0x6ea   : > { %v4018_v43 = vpop.f32.mrb[35].mxu1  ;;  %v2854_v54 = vadd.f32 %v3770_v45, %v2843_v39  ;;  %v1762_v39 = vld [vmem:[%s4838_s26] sm:$0x3]  ;;  %s5352_s26 = sld [smem:[#allocation51_spill]] }
 0x6ef   : > { %v2907_v46 = vpop.f32.mrb[36].mxu1 }
 0x6f0   : > { %v4266_v47 = vpop.eup %4265  ;;  %v2908_v48 = vadd.f32 %v3771_v44, %v2907_v46  ;;  %v4025_v49 = vpop.f32.mrb[37].mxu1 }
 0x6f1   : > { %v4268_v50 = vpop.eup %4267  ;;  %v2735_v51 = vadd.f32 1.0, %v4266_v47  ;;  %v2910_v52 = vpop.f32.mrb[38].mxu1  ;;  %v4243_v47 = vld [vmem:[%s5348_s5] sm:$0xff]  }
 0x6f2   : > { %v2913_v55 = vmul.f32 %v4268_v50, %v2908_v48  ;;  %v4026_v58 = vpop.f32.mrb[39].mxu1  ;;  %v4244_v48 = vld [vmem:[%s5348_s5 + $0x8] sm:$0xff]   ;;  %v3791_v49 = vld [vmem:[%s5349_s24] ss:$0 sm:$0xff]  ;;  %s5113_s24 = sshll.u32 %s4786_s0, 5  ;;  %s5121_s5 = scalar_lea.sflag [#allocation8], %s3389_s2 }
 0x6f3   : > { %4269 = vrcp.f32 %v2735_v51 }
 0x6f4   : > { %v2914_v60 = vadd.f32 %v2913_v55, %v2854_v54 }
 0x6f6   : > { %4271 = vtanh.f32 %v2914_v60 }
 0x6f7   : > { %v3018_v62 = vpop.f32.mrb[40].mxu1 }
 0x6f8   : > { %v3024_v59 = vadd.f32 %v3018_v62, %v2967_v3  ;;  %v4039_v63 = vpop.f32.mrb[41].mxu1  ;;  %v3799_v62 = vld [vmem:[%s5352_s26] ss:$0 sm:$0xff]  ;;  %s5353_s26 = scalar_lea.vmem [#allocation7], %s4826_s27 }
 0x6f9   : > { %v3021_v0 = vpop.f32.mrb[42].mxu1 }
 0x6fa   : > { %v3031_v4 = vadd.f32 %v3781_v61, %v3024_v59  ;;  %v4040_v5 = vpop.f32.mrb[43].mxu1 }
 0x6fc   : > { %v3782_v6 = vmul.f32 -1.442695, %v3031_v4 }
 0x6fd   : > { %v4270_v57 = vpop.eup %4269 }
 0x6fe   : > { %v2916_v7 = vsub.f32 1.0, %v4270_v57  ;;  %4273 = vpow2.f32 %v3782_v6  ;;  %v2918_v9 = vmul.f32 %v4270_v57, %v4990_v40  ;;  %v4240_v40 = vld [vmem:[%s5342_s3 + $0x8] sm:$0xff]   ;;  %s3430_s3 = sshll.u32 %s5353_s26, 4  ;;  %s3431_s3 = int_to_ptr.vmem [resolvable:$true] %s3430_s3 }
 0x6ff   : > { %s4287_s7 = scalar_lea.vmem %s3431_s3, 32  ;;  %p4294_p1 = scmp.lt.s32.totalorder %s3431_s3, %s4292_s9 }
 0x700   : > { %v4272_v8 = vpop.eup %4271  ;;  %p4288_p12 = scmp.ne.s32.totalorder %s3431_s3, %s4287_s7  ;;  %p4295_p2 = scmp.lt.s32.totalorder %s4293_s11, %s4287_s7 }
 0x701   : > { %v2917_v10 = vmul.f32 %v4272_v8, %v2916_v7 }
 0x702   : > { %p4289_p13 = pnand %p4288_p12, %p4805_p5  ;;  %p4296_p3 = por %p4295_p2, %p4294_p1 }
 0x703   : > { %v2919_v11 = vadd.f32 %v2918_v9, %v2917_v10 }
 0x704   : > { %p4290_p0 = pneg %p4289_p13 }
 0x705   : > { %3377 = vst.msk [vmem:[#allocation3] sm:$0x3] %vm3352_vm9, %v2919_v11  ;;  %3380 = vst.msk [vmem:[%s5343_s4] sm:$0x3] %vm3352_vm9, %v2919_v11  ;;  %v3225_v17 = vpack.c.bf16 %v2919_v11, %v2919_v11  ;;  %s5347_s4 = sld [smem:[#allocation43_spill]] }
 0x706   : > { %p4297_p4 = pnand %p4296_p3, %p4290_p0 }
 0x708   : > { %v4274_v12 = vpop.eup %4273 }
 0x709   : > { %v3035_v13 = vadd.f32 1.0, %v4274_v12 }
 0x70b   : > { %4275 = vrcp.f32 %v3035_v13  ;;  %v3783_v31 = vld [vmem:[%s5347_s4] ss:$0 sm:$0xff]  ;;  %s5351_s4 = scalar_lea.vmem [#allocation10], %s4826_s27 }
 0x715   : > { %v4276_v14 = vpop.eup %4275 }
 0x716   : > { %v3038_v16 = vpack.c.bf16 %v4276_v14, %v4276_v14 }
 0x718   : > { %4046 = vmatmul.mubr.msk.bf16.vlgmr.msra.gmra.mrb[32].mxu0 %vm1778_vm7, %v3038_v16  ;;  %4054 = vmatmul.mubr.msk.bf16.vlgmr.msra.gmra.mrb[44].mxu1 %vm1778_vm7, %v3038_v16 }
 0x719   : > { %4066 = vmatpush3.bf16.msra.mxu1 %v4239_v15  ;;  %4069 = vmatprep.mubr.msk.bf16.mxu1 %vm4496_vm5, %v4495_v53 }
 0x71a   : > { %4067 = vmatprep.subr.bf16.mxu1 %v4495_v53  ;;  %4061 = vmatprep.mubr.msk.bf16.mxu0 %vm4496_vm5, %v4495_v53 }
 0x71b   : > { %4058 = vmatpush3.bf16.msra.mxu0 %v4241_v18 }
 0x71c   : > { %4059 = vmatprep.subr.bf16.mxu0 %v4495_v53 }
 0x71d   : > { %4068 = vmatpush3.bf16.msra.mxu1 %v4240_v40 }
 0x71f   : > { %4060 = vmatpush3.bf16.msra.mxu0 %v4242_v19 }
 0x720   : > { %4070 = vmatmul.mubr.msk.bf16.vlgmr.msra.gmra.mrb[48].mxu1 %vm1778_vm7, %v3225_v17  ;;  %4073 = vmatprep.subr.bf16.mxu0 %v4495_v53 }
 0x7eb   : > { %v3094_v21 = vpop.f32.mrb[32].mxu0  ;;  %v3152_v22 = vpop.f32.mrb[44].mxu1 }
 0x7ec   : > { %v3153_v23 = vadd.f32 %v3787_v20, %v3152_v22  ;;  %v4047_v24 = vpop.f32.mrb[33].mxu0  ;;  %v4055_v25 = vpop.f32.mrb[45].mxu1  ;;  %v3095_v34 = vadd.f32 %v3783_v31, %v3094_v21 }
 0x7ed   : > { %v3097_v26 = vpop.f32.mrb[34].mxu0  ;;  %v3155_v2 = vpop.f32.mrb[46].mxu1 }
 0x7ee   : > { %v3158_v27 = vmul.f32 0.5, %v3153_v23  ;;  %v3366_v1 = vmul.f32 1.442695, %v3153_v23  ;;  %v4048_v28 = vpop.f32.mrb[35].mxu0  ;;  %v4056_v29 = vpop.f32.mrb[47].mxu1  ;;  %v3368_v37 = vmul.f32 %v3095_v34, %v3095_v34 }
 0x7f0   : > { %v3159_v30 = vmul.f32 1.442695, %v3158_v27  ;;  %4277 = vpow2.f32 %v3366_v1 }
 0x7f2   : > { %4279 = vpow2.f32 %v3159_v30 }
 0x7f3   : > { %v3275_v32 = vpop.f32.mrb[48].mxu1 }
 0x7f4   : > { %v4071_v33 = vpop.f32.mrb[49].mxu1 }
 0x7f5   : > { %v3278_v35 = vpop.f32.mrb[50].mxu1 }
 0x7f6   : > { %v4072_v36 = vpop.f32.mrb[51].mxu1 }
 0x7fa   : > { %v4278_v38 = vpop.eup %4277 }
 0x7fb   : > { %v3369_v41 = vadd.f32 %v4278_v38, %v3368_v37 }
 0x7fc   : > { %v4280_v42 = vpop.eup %4279 }
 0x7fd   : > { %v3161_v43 = vmul.f32 %v4280_v42, %v1762_v39  ;;  %v3370_v44 = vsub.f32 %v3369_v41, %v3153_v23 }
 0x7ff   : > { %v3162_v45 = vadd.f32 %v3161_v43, %v3095_v34  ;;  %v3803_v10 = vadd.f32 -1.0, %v3370_v44 }
 0x801   : > { %v3163_v46 = vpack.c.bf16 %v3162_v45, %v3162_v45  ;;  %3381 = vst.msk [vmem:[%s5351_s4] sm:$0x3] %vm3352_vm9, %v3162_v45  ;;  %v3372_v11 = vsel %vm3352_vm9, %v3803_v10, 0.0  ;;  %s5117_s4 = scalar_lea.hbm %s5303_s1, %s5113_s24 }
 0x803   : > { %4062 = vmatmul.mubr.msk.bf16.vlgmr.msra.gmra.mrb[36].mxu0 %vm1778_vm7, %v3163_v46 }
 0x804   : > { %4077 = vmatprep.mubr.msk.bf16.mxu0 %vm4496_vm5, %v4495_v53  ;;  %4074 = vmatpush3.bf16.msra.mxu0 %v4243_v47 }
 0x805   : > { %4075 = vmatprep.subr.bf16.mxu0 %v4495_v53 }
 0x808   : > { %4076 = vmatpush3.bf16.msra.mxu0 %v4244_v48 }
 0x8d6   : > { %v3219_v50 = vpop.f32.mrb[36].mxu0 }
 0x8d7   : > { %v3220_v51 = vadd.f32 %v3791_v49, %v3219_v50  ;;  %v4063_v52 = vpop.f32.mrb[37].mxu0 }
 0x8d8   : > { %v3222_v54 = vpop.f32.mrb[38].mxu0 }
 0x8d9   : > { %v3281_v55 = vadd.f32 %v3275_v32, %v3220_v51  ;;  %v4064_v58 = vpop.f32.mrb[39].mxu0 }
 0x8db   : > { %v3288_v60 = vadd.f32 %v3798_v56, %v3281_v55 }
 0x8dd   : > { %4281 = vtanh.f32 %v3288_v60 }
 0x8e7   : > { %v4282_v3 = vpop.eup %4281 }
 0x8e8   : > { %v3290_v61 = vpack.c.bf16 %v4282_v3, %v4282_v3 }
 0x8ea   : > { %4078 = vmatmul.mubr.msk.bf16.vlgmr.msra.gmra.mrb[40].mxu0 %vm1778_vm7, %v3290_v61 }
 0x9bd   : > { %v3346_v59 = vpop.f32.mrb[40].mxu0 }
 0x9be   : > { %v5101_v53 = vadd.f32 %v3799_v62, %v3346_v59  ;;  %v4079_v63 = vpop.f32.mrb[41].mxu0 }
 0x9bf   : > { %v3349_v0 = vpop.f32.mrb[42].mxu0 }
 0x9c0   : > { %v4080_v4 = vpop.f32.mrb[43].mxu0  ;;  %v3353_v5 = vsel %vm3352_vm9, %v5101_v53, -inf }
 0x9c1   : > { %3354 = vmax.xlane.f32.xlu1 %v3353_v5 }
 0xa4e   : > { %v5105_v6 = vpop.xlane.xlu1 %3354 }
 0xa4f   : > { %v3356_v57 = vsub.f32 %v5101_v53, %v5105_v6 }
 0xa51   : > { %v3357_v7 = vmul.f32 1.442695, %v3356_v57 }
 0xa53   : > { %4283 = vpow2.f32 %v3357_v7 }
 0xa5d   : > { %v4284_v8 = vpop.eup %4283 }
 0xa5e   : > { %v3359_v9 = vsel %vm3352_vm9, %v4284_v8, 0.0 }
 0xa5f   : > { %3360 = vadd.xlane.f32.xlu0 %v3359_v9 }
 0xa63   : > { %3373 = vadd.xlane.f32.xlu0 %v3372_v11 }
 0xa64   : > { %4300 = shalt.err (!%p4297_p4)
}
 0xa65   : > { %s4301_s0 = scalar_lea.hbm %s5117_s4, 32  ;;  %s4305_s8 = scalar_lea.hbm %s5303_s1, 128 }
 0xa66   : > { %p4302_p7 = scmp.ne.s32.totalorder %s5117_s4, %s4301_s0  ;;  %p4306_p10 = scmp.lt.u32.totalorder %s5117_s4, %s5303_s1 }
 0xa67   : > { %p4307_p11 = scmp.lt.u32.totalorder %s4305_s8, %s4301_s0  ;;  %p4309_p13 = scmp.lt.u32.totalorder %s4301_s0, %s5117_s4 }
 0xa68   : > { %p4303_p8 = pnand %p4302_p7, %p4805_p5 }
 0xa69   : > { %p4308_p12 = por %p4307_p11, %p4306_p10 }
 0xa6a   : > { %p4304_p9 = pneg %p4303_p8 }
 0xa6b   : > { %p4310_p1 = por %p4309_p13, %p4308_p12 }
 0xa6d   : > { %p4311_p0 = pnand %p4310_p1, %p4304_p9 }
 0xa6f   : > { %4314 = shalt.err (!%p4311_p0)
}
 0xa70   : > { %4084 = dma.vmem_to_hbm [thread:$0]  (%p4805_p5), %s3431_s3, 32, %s5117_s4, %s5121_s5  }
 0xa71   : > { %s5139_s9 = scalar_lea.hbm %s4753_s10, %s5113_s24  ;;  %s5354_s11 = scalar_lea.vmem [#allocation9], %s4826_s27 }
 0xa72   : > { %s3443_s7 = sshll.u32 %s5354_s11, 4  ;;  %s4499_s26 = smov [#allocation9]   ;;  %s3444_s7 = int_to_ptr.vmem [resolvable:$true] %s3443_s7 }
 0xa73   : > { %s4315_s2 = scalar_lea.vmem %s3444_s7, 32  ;;  %s4319_s0 = sshll.u32 %s4499_s26, 4  ;;  %s4320_s0 = int_to_ptr.vmem [resolvable:$false] %s4319_s0 }
 0xa74   : > { %p4316_p2 = scmp.ne.s32.totalorder %s3444_s7, %s4315_s2  ;;  %s4321_s8 = scalar_lea.vmem %s4320_s0, 64 }
 0xa75   : > { %p4322_p7 = scmp.lt.s32.totalorder %s3444_s7, %s4320_s0  ;;  %p4323_p8 = scmp.lt.s32.totalorder %s4321_s8, %s4315_s2 }
 0xa76   : > { %p4317_p3 = pnand %p4316_p2, %p4805_p5 }
 0xa77   : > { %p4324_p9 = por %p4323_p8, %p4322_p7 }
 0xa78   : > { %p4318_p4 = pneg %p4317_p3 }
 0xa7a   : > { %p4325_p10 = pnand %p4324_p9, %p4318_p4 }
 0xa7c   : > { %4328 = shalt.err (!%p4325_p10)
}
 0xa7d   : > { %s4329_s3 = scalar_lea.hbm %s5139_s9, 32  ;;  %s4333_s4 = scalar_lea.hbm %s4753_s10, 128 }
 0xa7e   : > { %p4330_p11 = scmp.ne.s32.totalorder %s5139_s9, %s4329_s3  ;;  %p4334_p1 = scmp.lt.u32.totalorder %s5139_s9, %s4753_s10 }
 0xa7f   : > { %p4335_p0 = scmp.lt.u32.totalorder %s4333_s4, %s4329_s3  ;;  %p4337_p3 = scmp.lt.u32.totalorder %s4329_s3, %s5139_s9 }
 0xa80   : > { %p4331_p12 = pnand %p4330_p11, %p4805_p5 }
 0xa81   : > { %p4336_p2 = por %p4335_p0, %p4334_p1 }
 0xa82   : > { %p4332_p13 = pneg %p4331_p12 }
 0xa83   : > { %p4338_p7 = por %p4337_p3, %p4336_p2 }
 0xa85   : > { %p4339_p4 = pnand %p4338_p7, %p4332_p13 }
 0xa87   : > { %4342 = shalt.err (!%p4339_p4)
}
 0xa88   : > { %4085 = dma.vmem_to_hbm [thread:$0]  (%p4805_p5), %s3444_s7, 32, %s5139_s9, %s5121_s5  }
 0xa89   : > { %s5159_s11 = scalar_lea.hbm %s4758_s15, %s5113_s24  ;;  %s5355_s2 = scalar_lea.vmem [#allocation10], %s4826_s27 }
 0xa8a   : > { %s3456_s26 = sshll.u32 %s5355_s2, 4  ;;  %s3400_s0 = scalar_lea.sflag [#allocation11], %s4816_s18  ;;  %s3457_s26 = int_to_ptr.vmem [resolvable:$true] %s3456_s26 }
 0xa8b   : > { %s4343_s8 = scalar_lea.vmem %s3457_s26, 32  ;;  %s4500_s3 = smov [#allocation10]  }
 0xa8c   : > { %p4344_p8 = scmp.ne.s32.totalorder %s3457_s26, %s4343_s8  ;;  %s4347_s4 = sshll.u32 %s4500_s3, 4  ;;  %s4348_s4 = int_to_ptr.vmem [resolvable:$false] %s4347_s4 }
 0xa8d   : > { %s4349_s1 = scalar_lea.vmem %s4348_s4, 64  ;;  %p4350_p11 = scmp.lt.s32.totalorder %s3457_s26, %s4348_s4 }
 0xa8e   : > { %p4345_p9 = pnand %p4344_p8, %p4805_p5  ;;  %p4351_p12 = scmp.lt.s32.totalorder %s4349_s1, %s4343_s8 }
 0xa90   : > { %p4346_p10 = pneg %p4345_p9  ;;  %p4352_p13 = por %p4351_p12, %p4350_p11 }
 0xa92   : > { %p4353_p1 = pnand %p4352_p13, %p4346_p10 }
 0xa94   : > { %4356 = shalt.err (!%p4353_p1)
}
 0xa95   : > { %s4357_s5 = scalar_lea.hbm %s5159_s11, 32  ;;  %s4361_s9 = scalar_lea.hbm %s4758_s15, 128 }
 0xa96   : > { %p4358_p0 = scmp.ne.s32.totalorder %s5159_s11, %s4357_s5  ;;  %p4362_p7 = scmp.lt.u32.totalorder %s5159_s11, %s4758_s15 }
 0xa97   : > { %p4363_p4 = scmp.lt.u32.totalorder %s4361_s9, %s4357_s5  ;;  %p4365_p9 = scmp.lt.u32.totalorder %s4357_s5, %s5159_s11 }
 0xa98   : > { %p4359_p2 = pnand %p4358_p0, %p4805_p5 }
 0xa99   : > { %p4364_p8 = por %p4363_p4, %p4362_p7 }
 0xa9a   : > { %p4360_p3 = pneg %p4359_p2 }
 0xa9b   : > { %p4366_p11 = por %p4365_p9, %p4364_p8 }
 0xa9d   : > { %p4367_p10 = pnand %p4366_p11, %p4360_p3 }
 0xa9f   : > { %4370 = shalt.err (!%p4367_p10)
}
 0xaa0   : > { %s5356_s1 = sld [smem:[#allocation52_spill]]  ;;  %vm3382_vm13 = vcmask 1024   ;;  %s5357_s7 = scalar_lea.vmem [#allocation5], %s4826_s27 }
 0xaa1   : > { %4086 = dma.vmem_to_hbm [thread:$0]  (%p4805_p5), %s3457_s26, 32, %s5159_s11, %s3400_s0  }
 0xaa2   : > { %s3417_s2 = sshll.u32 %s5357_s7, 4  ;;  %s5358_s11 = smov %s5357_s7  ;;  %s5186_s2 = int_to_ptr.vmem [resolvable:$true] %s3417_s2 }
 0xaa3   : > { %s3385_s26 = scalar_lea.sflag [#allocation6], %s4816_s18  ;;  %s4501_s0 = smov [#allocation5]  }
 0xaa4   : > { %s4375_s3 = sshll.u32 %s4501_s0, 4  ;;  %s4376_s3 = int_to_ptr.vmem [resolvable:$false] %s4375_s3 }
 0xaa5   : > { %s4377_s4 = scalar_lea.vmem %s4376_s3, 64  ;;  %p4378_p0 = scmp.lt.s32.totalorder %s5186_s2, %s4376_s3 }
 0xaa6   : > { %s5184_s8 = scalar_lea.hbm %s5356_s1, %s5113_s24 }
 0xaec   : > { %v3361_v12 = vpop.xlane.xlu0 %3360 }
 0xaed   : > { %4285 = vlog2.f32 %v3361_v12 }
 0xaf0   : > { %v3374_v13 = vpop.xlane.xlu0 %3373 }
 0xaf1   : > { %v3375_v14 = vmul.f32 0.5, %v3374_v13 }
 0xaf3   : > { %3383 = vst.msk [vmem:[%s4841_s23] sm:$0x3] %vm3382_vm13, %v3375_v14  ;;  %s4371_s23 = scalar_lea.vmem %s5186_s2, 32 }
 0xaf4   : > { %p4372_p12 = scmp.ne.s32.totalorder %s5186_s2, %s4371_s23  ;;  %p4379_p2 = scmp.lt.s32.totalorder %s4377_s4, %s4371_s23 }
 0xaf6   : > { %p4373_p13 = pnand %p4372_p12, %p4805_p5  ;;  %p4380_p3 = por %p4379_p2, %p4378_p0 }
 0xaf7   : > { %v4286_v15 = vpop.eup %4285 }
 0xaf8   : > { %v3363_v16 = vmul.f32 0.6931472, %v4286_v15  ;;  %p4374_p1 = pneg %p4373_p13 }
 0xafa   : > { %v3364_v40 = vadd.f32 %v3363_v16, %v5105_v6  ;;  %p4381_p7 = pnand %p4380_p3, %p4374_p1 }
 0xafc   : > { %v3365_v17 = vsub.f32 %v5101_v53, %v3364_v40 }
 0xafe   : > { %3378 = vst.msk [vmem:[%s5358_s11] sm:$0x3] %vm3352_vm9, %v3365_v17 }
 0xaff   : > { %4384 = shalt.err (!%p4381_p7)
}
 0xb00   : > { %s4385_s18 = scalar_lea.hbm %s5184_s8, 32  ;;  %s4389_s27 = scalar_lea.hbm %s5356_s1, 128 }
 0xb01   : > { %p4386_p4 = scmp.ne.s32.totalorder %s5184_s8, %s4385_s18  ;;  %p4390_p11 = scmp.lt.u32.totalorder %s5184_s8, %s5356_s1 }
 0xb02   : > { %p4391_p10 = scmp.lt.u32.totalorder %s4389_s27, %s4385_s18  ;;  %p4393_p13 = scmp.lt.u32.totalorder %s4385_s18, %s5184_s8 }
 0xb03   : > { %p4387_p8 = pnand %p4386_p4, %p4805_p5 }
 0xb04   : > { %p4392_p12 = por %p4391_p10, %p4390_p11 }
 0xb05   : > { %p4388_p9 = pneg %p4387_p8 }
 0xb06   : > { %p4394_p0 = por %p4393_p13, %p4392_p12 }
 0xb08   : > { %p4395_p1 = pnand %p4394_p0, %p4388_p9 }
 0xb0a   : > { %4398 = shalt.err (!%p4395_p1)
}
 0xb0b   : > { %4083 = dma.vmem_to_hbm [thread:$0]  (%p4805_p5), %s5186_s2, 32, %s5184_s8, %s3385_s26  }
 0xb0c PF: > { %s5359_s24 = sld [smem:[#allocation54_spill]]  ;;  %p4104_p2 = scmp.ge.s32.totalorder %s4441_s6, 2 }
 0xb0e   : > { %p4092_p3 = pnand %p4104_p2, %p4809_p6 }
 0xb12   : > { %s3471_s9 = sand.u32 1, %s5359_s24  }
 0xb13   : > { %s3472_s7 = scalar_lea.sflag [#allocation6], %s3471_s9 }
 0xb14   : > { %4416 = dma.done.wait (!%p4092_p3), %s3472_s7, 32  }
 0xb15   : > { %4418 = vsyncadd (!%p4092_p3), %s3472_s7, 4294967264  ;;  %s5361_s11 = sadd.s32 4294967294, %s4441_s6  }
 0xb16   : > { %s3480_s23 = sand.u32 1, %s5361_s11  }
 0xb17   : > { %s3481_s0 = scalar_lea.sflag [#allocation8], %s3480_s23 }
 0xb18   : > { %4420 = dma.done.wait (!%p4092_p3), %s3481_s0, 64  }
 0xb19   : > { %4422 = vsyncadd (!%p4092_p3), %s3481_s0, 4294967232  ;;  %s3499_s12 = scalar_lea.sflag [#allocation11], %s3471_s9 }
 0xb1a   : > { %4424 = dma.done.wait (!%p4092_p3), %s3499_s12, 32  }
 0xb1b   : > { %4426 = vsyncadd (!%p4092_p3), %s3499_s12, 4294967264  ;;  %s5362_s6 = sld [smem:[#allocation57_spill]]  ;;  %s5363_s24 = sld [smem:[#allocation55_spill]] }
 0xb1c   : > { %s5364_s23 = sld [smem:[#allocation56_spill]]  ;;  %s5365_s26 = sld [smem:[#allocation58_spill]] }
 0xb21   : > { %p122_p5 = scmp.ge.s32.totalorder %s5362_s6, 6  }
 0xb23   :  { %124 = sbr.rel (!%p122_p5) target bundleno = 101 (0x65), region = 362 }
 0xb2a   :  { %3511 = vsyncpa [#allocation6], 1 }
 0xb2b   :  { %3513 = vsyncpa [#allocation6 + $0x1], 1 }
 0xb2c   :  { %3514 = vsyncpa [#allocation8], 1 }
 0xb2d   :  { %3516 = vsyncpa [#allocation8 + $0x1], 1 }
 0xb2e   :  { %3517 = vsyncpa [#allocation11], 1 }
 0xb2f   :  { %3519 = vsyncpa [#allocation11 + $0x1], 1 }

</bundles_post_ra>
